<compile_context>
chip_gen: v6e
topology: v6e:2x2x1
jax: 0.10.0
libtpu: 0.0.40
codegen_flags: <defaults>
</compile_context>

<pallas_src>
import math
import numpy as np
import jax
import jax.numpy as jnp
from jax.experimental import pallas as pl
from jax.experimental.pallas import tpu as pltpu

D_MODEL = 32
N_HEADS = 4


def _make_stsa_kernel(T, D, H):
    E = 2 * H * T          # expanded key axis: (type a, head h, key t)

    def kernel(x_ref, wq_ref, wk_ref, wv_ref, kvm_ref, wo_ref,
               gate_ref, extra_ref, rg_ref, out_ref):
        Ns = x_ref.shape[0]
        G = Ns // T                                            # (batch, route) groups this step

        x_in = x_ref[...]                                      # [Ns, Din]  ([x_self|x_nbr|1|0...])

        # Fused (temporal | spatial) projections; scale + biases are folded into the weights.
        q = jnp.dot(x_in, wq_ref[...], preferred_element_type=jnp.float32)   # [Ns, 2D] = [Qt|Qs]
        k = jnp.dot(x_in, wk_ref[...], preferred_element_type=jnp.float32)   # [Ns, 2D] = [Kt|Ks]
        v = jnp.dot(x_in, wv_ref[...], preferred_element_type=jnp.float32)   # [Ns, 2D] = [Vt|Vs]

        q3 = q.reshape(G, T, 2 * D)                            # free reshapes (row-major split)
        k3 = k.reshape(G, T, 2 * D)
        v3 = v.reshape(G, T, 2 * D)

        # Key/value expansion: row e = (type a, head h, key t); the static mask keeps only the
        # matching (a, h) column block, so one matmul per (b, m) covers every head of both the
        # temporal and the spatial attention (no per-head lane slicing anywhere).
        kvm = kvm_ref[...]                                     # [E, 2D] 0/1 mask
        k_exp = jnp.concatenate([k3] * (2 * H), axis=1) * kvm[None, :, :]     # [G, E, 2D]
        v_exp = jnp.concatenate([v3] * (2 * H), axis=1) * kvm[None, :, :]     # [G, E, 2D]

        s = jnp.einsum("gqd,ged->gqe", q3, k_exp,
                       preferred_element_type=jnp.float32)     # [G, T, E] scores (pre-scaled)
        # Per-(g,q) max over all heads/types: exact for softmax, cheaper than per-segment max.
        s = s - jnp.max(s, axis=-1, keepdims=True)
        p = jnp.exp(s)

        ctx = jnp.einsum("gqe,ged->gqd", p, v_exp,
                         preferred_element_type=jnp.float32).reshape(Ns, 2 * D)   # [t_ctx|s_ctx]
        # Per-(type, head) softmax denominators replicated onto the matching ctx columns.
        denom = jnp.dot(p.reshape(Ns, E), kvm,
                        preferred_element_type=jnp.float32)    # [Ns, 2D]
        ctx = ctx * pl.reciprocal(denom, approx=True) * gate_ref[...]   # gate: [1 | has_nbr]

        # Fused output projection + bias (bot + has*bos) + residual x for no-neighbor routes.
        out = (jnp.dot(ctx, wo_ref[...], preferred_element_type=jnp.float32)
               + extra_ref[...] + rg_ref[...] * x_in[:, 0:D])
        out_ref[...] = out.astype(out_ref.dtype)

    return kernel


def _default_steps(B):
    # v7x has two TensorCores per chip -> give each one a batch chunk; single-TC chips
    # (v5e / v6e) get one fused step so there is no per-step pipeline overhead.
    try:
        kind = jax.devices()[0].device_kind.lower()
    except Exception:
        return 1
    if B % 2 == 0 and ("v7" in kind or "7x" in kind):
        return 2
    return 1


def stsa_pallas(x, route_neighbors, params, n_heads=N_HEADS, steps=None):
    """x: [B, T, M, D] float32 (PyTorch layout); route_neighbors: static list of lists."""
    x = x.astype(jnp.float32)
    B, T, M, D = x.shape
    H = n_heads
    dh = D // H
    scale = 1.0 / math.sqrt(dh)
    N = B * M * T
    E = 2 * H * T
    Din = ((2 * D + 1 + 127) // 128) * 128                    # padded input lane width (128)

    if steps is None:
        steps = _default_steps(B)
    if N % steps != 0 or (N // steps) % 8 != 0:
        steps = 1
    Ns = N // steps

    # ---- static neighbor structure (mirrors the Python loop in the PyTorch forward) ----
    nbr_idx = np.array([nb[0] if len(nb) > 0 else m
                        for m, nb in enumerate(route_neighbors)], np.int32)
    has = np.array([1.0 if len(nb) > 0 else 0.0 for nb in route_neighbors], np.float32)

    # ---- data rows in (b, m, t) order; self and neighbor series side by side + ones column ----
    x_bm = jnp.transpose(x, (0, 2, 1, 3))                     # [B, M, T, D] (HBM transpose, once)
    x_self = x_bm.reshape(N, D)
    x_nbr = x_bm[:, nbr_idx, :, :].reshape(N, D)              # host-side neighbor gather (static)
    x_in = jnp.concatenate(
        [x_self, x_nbr, jnp.ones((N, 1), jnp.float32),
         jnp.zeros((N, Din - 2 * D - 1), jnp.float32)], axis=-1)          # [N, Din]

    # ---- fused projection weights (scale + bias folded in via the ones column at 2D) ----
    wt, bt = params["wt"], params["bt"]
    ws, bs = params["ws"], params["bs"]
    zDD = jnp.zeros((D, D), jnp.float32)

    def build_w(block_self, block_nbr, bias_row):
        W = jnp.zeros((Din, 2 * D), jnp.float32)
        W = W.at[0:D].set(block_self)          # applied to x_self columns
        W = W.at[D:2 * D].set(block_nbr)       # applied to x_nbr columns
        W = W.at[2 * D].set(bias_row)          # driven by the ones column
        return W

    w_q = build_w(jnp.concatenate([wt[0:D].T * scale, ws[0:D].T * scale], axis=1),
                  jnp.zeros((D, 2 * D), jnp.float32),
                  jnp.concatenate([bt[0:D] * scale, bs[0:D] * scale]))
    w_k = build_w(jnp.concatenate([wt[D:2 * D].T, zDD], axis=1),
                  jnp.concatenate([zDD, ws[D:2 * D].T], axis=1),
                  jnp.concatenate([bt[D:2 * D], bs[D:2 * D]]))
    w_v = build_w(jnp.concatenate([wt[2 * D:3 * D].T, zDD], axis=1),
                  jnp.concatenate([zDD, ws[2 * D:3 * D].T], axis=1),
                  jnp.concatenate([bt[2 * D:3 * D], bs[2 * D:3 * D]]))

    # ---- static (type, head) mask over the expanded key axis ----
    e_idx = np.arange(E)
    a_of_e = e_idx // (H * T)
    h_of_e = (e_idx // T) % H
    d_idx = np.arange(2 * D)
    a_of_d = d_idx // D
    h_of_d = (d_idx % D) // dh
    kv_mask = jnp.asarray(((a_of_e[:, None] == a_of_d[None, :]) &
                           (h_of_e[:, None] == h_of_d[None, :])).astype(np.float32))  # [E, 2D]

    # ---- output projection weights / gates / biases ----
    wo_cat = jnp.concatenate([params["wot"].T, params["wos"].T], axis=0)   # [2D, D]
    has_rows = jnp.asarray(np.repeat(np.tile(has, B), T))                  # [N], (b, m, t) order
    out_gate = jnp.concatenate(
        [jnp.ones((N, D), jnp.float32),
         jnp.broadcast_to(has_rows[:, None], (N, D))], axis=-1)            # [N, 2D] = [1 | has]
    out_extra = params["bot"][None, :] + has_rows[:, None] * params["bos"][None, :]   # [N, D]
    resid_gate = jnp.broadcast_to(1.0 - has_rows[:, None], (N, D))         # [N, D]

    row_spec = lambda w: pl.BlockSpec((Ns, w), lambda i: (i, 0))
    full_spec = lambda shape: pl.BlockSpec(shape, lambda i: (0, 0))

    grid_spec = pltpu.PrefetchScalarGridSpec(
        num_scalar_prefetch=0,
        grid=(steps,),
        in_specs=[
            row_spec(Din),                 # x_in
            full_spec((Din, 2 * D)),       # w_q
            full_spec((Din, 2 * D)),       # w_k
            full_spec((Din, 2 * D)),       # w_v
            full_spec((E, 2 * D)),         # kv_mask
            full_spec((2 * D, D)),         # wo_cat
            row_spec(2 * D),               # out_gate
            row_spec(D),                   # out_extra
            row_spec(D),                   # resid_gate
        ],
        out_specs=pl.BlockSpec((Ns, D), lambda i: (i, 0)),
    )

    out = pl.pallas_call(
        _make_stsa_kernel(T, D, H),
        out_shape=jax.ShapeDtypeStruct((N, D), jnp.float32),
        grid_spec=grid_spec,
        compiler_params=pltpu.CompilerParams(
            dimension_semantics=("parallel",)),
    )(x_in, w_q, w_k, w_v, kv_mask, wo_cat, out_gate, out_extra, resid_gate)

    # [N, D] rows (b, m, t) -> [B, T, M, D] (cheap HBM transpose in the wrapper).
    return out.reshape(B, M, T, D).transpose(0, 2, 1, 3)


# ------------------------- pure-JAX reference (for checking) -------------------------
def _mha_single_ref(q_seq, kv_seq, w_in, b_in, wo, bo, n_heads):
    D = q_seq.shape[-1]
    dh = D // n_heads
    q = q_seq @ w_in[:D].T + b_in[:D]
    k = kv_seq @ w_in[D:2 * D].T + b_in[D:2 * D]
    v = kv_seq @ w_in[2 * D:].T + b_in[2 * D:]
    Tq, S = q.shape[0], k.shape[0]
    qh = q.reshape(Tq, n_heads, dh).transpose(1, 0, 2)
    kh = k.reshape(S, n_heads, dh).transpose(1, 0, 2)
    vh = v.reshape(S, n_heads, dh).transpose(1, 0, 2)
    s = jnp.einsum("htd,hsd->hts", qh, kh) / math.sqrt(dh)
    p = jax.nn.softmax(s, axis=-1)
    o = jnp.einsum("hts,hsd->htd", p, vh).transpose(1, 0, 2).reshape(Tq, D)
    return o @ wo.T + bo


def stsa_ref(x, route_neighbors, params, n_heads):
    B, T, M, D = x.shape
    out = np.zeros((B, T, M, D), np.float32)
    for b in range(B):
        for m in range(M):
            seq = x[b, :, m, :]
            t_o = _mha_single_ref(seq, seq, params["wt"], params["bt"],
                                  params["wot"], params["bot"], n_heads)
            nbrs = route_neighbors[m]
            if len(nbrs) == 0:
                s_o = seq
            else:
                kv = x[b, :, nbrs[0], :]
                s_o = _mha_single_ref(seq, kv, params["ws"], params["bs"],
                                      params["wos"], params["bos"], n_heads)
            out[b, :, m, :] = np.asarray(t_o + s_o)
    return out


if __name__ == "__main__":
    B, T, M, D, H = 2, 8, 6, D_MODEL, N_HEADS

    key = jax.random.PRNGKey(0)
    ks = jax.random.split(key, 9)
    params = {
        "wt": jax.random.normal(ks[0], (3 * D, D), jnp.float32) * 0.1,   # temporal in_proj_weight
        "bt": jax.random.normal(ks[1], (3 * D,), jnp.float32) * 0.01,    # temporal in_proj_bias
        "wot": jax.random.normal(ks[2], (D, D), jnp.float32) * 0.1,      # temporal out_proj.weight
        "bot": jax.random.normal(ks[3], (D,), jnp.float32) * 0.01,       # temporal out_proj.bias
        "ws": jax.random.normal(ks[4], (3 * D, D), jnp.float32) * 0.1,   # spatial in_proj_weight
        "bs": jax.random.normal(ks[5], (3 * D,), jnp.float32) * 0.01,    # spatial in_proj_bias
        "wos": jax.random.normal(ks[6], (D, D), jnp.float32) * 0.1,      # spatial out_proj.weight
        "bos": jax.random.normal(ks[7], (D,), jnp.float32) * 0.01,       # spatial out_proj.bias
    }
    x = jax.random.normal(ks[8], (B, T, M, D), jnp.float32)

    # each route has 0 or 1 neighbor (the only cases the PyTorch reference runs for)
    route_neighbors = [[1], [0], [3], [], [5], [4]]

    out = stsa_pallas(x, route_neighbors, params, n_heads=H)
    out = jax.block_until_ready(out)

    ref = stsa_ref(np.asarray(x), route_neighbors, params, H)
    np.testing.assert_allclose(np.asarray(out), ref, atol=2e-3, rtol=2e-3)

    print("KERNEL_OK")
</pallas_src>

<mosaic_0001>
module attributes {stable_mosaic.version = 11 : i64} {
  func.func @kernel(%arg0: i32, %arg1: memref<96x128xf32, #tpu.memory_space<vmem>>, %arg2: memref<128x64xf32, #tpu.memory_space<vmem>>, %arg3: memref<128x64xf32, #tpu.memory_space<vmem>>, %arg4: memref<128x64xf32, #tpu.memory_space<vmem>>, %arg5: memref<64x64xf32, #tpu.memory_space<vmem>>, %arg6: memref<64x32xf32, #tpu.memory_space<vmem>>, %arg7: memref<96x64xf32, #tpu.memory_space<vmem>>, %arg8: memref<96x32xf32, #tpu.memory_space<vmem>>, %arg9: memref<96x32xf32, #tpu.memory_space<vmem>>, %arg10: memref<96x32xf32, #tpu.memory_space<vmem>>) attributes {dimension_semantics = [#tpu.dimension_semantics<parallel>], iteration_bounds = array<i64: 1>, scalar_prefetch = 0 : i64, scratch_operands = 0 : i64, tpu.core_type = #tpu.core_type<tc>, window_params = [{transform_indices = @transform_0, window_bounds = array<i64: 96, 128>}, {pipeline_mode = #tpu.pipeline_mode<synchronous>, transform_indices = @transform_1, window_bounds = array<i64: 128, 64>}, {pipeline_mode = #tpu.pipeline_mode<synchronous>, transform_indices = @transform_2, window_bounds = array<i64: 128, 64>}, {pipeline_mode = #tpu.pipeline_mode<synchronous>, transform_indices = @transform_3, window_bounds = array<i64: 128, 64>}, {pipeline_mode = #tpu.pipeline_mode<synchronous>, transform_indices = @transform_4, window_bounds = array<i64: 64, 64>}, {pipeline_mode = #tpu.pipeline_mode<synchronous>, transform_indices = @transform_5, window_bounds = array<i64: 64, 32>}, {transform_indices = @transform_6, window_bounds = array<i64: 96, 64>}, {transform_indices = @transform_7, window_bounds = array<i64: 96, 32>}, {transform_indices = @transform_8, window_bounds = array<i64: 96, 32>}, {transform_indices = @transform_9, window_bounds = array<i64: 96, 32>}]} {
    %c0 = arith.constant 0 : index
    %c0_0 = arith.constant 0 : index
    %0 = vector.load %arg1[%c0, %c0_0] : memref<96x128xf32, #tpu.memory_space<vmem>>, vector<96x128xf32>
    %c0_1 = arith.constant 0 : index
    %c0_2 = arith.constant 0 : index
    %1 = vector.load %arg2[%c0_1, %c0_2] : memref<128x64xf32, #tpu.memory_space<vmem>>, vector<128x64xf32>
    %cst = arith.constant dense<0.000000e+00> : vector<96x64xf32>
    %2 = tpu.matmul %0, %1, %cst {dimension_numbers = #tpu.dot_dimension_numbers<[1], [0], [0], [1], [0, 0, 1, 1], [], []>} : vector<96x128xf32>, vector<128x64xf32>, vector<96x64xf32> -> vector<96x64xf32>
    %c0_3 = arith.constant 0 : index
    %c0_4 = arith.constant 0 : index
    %3 = vector.load %arg3[%c0_3, %c0_4] : memref<128x64xf32, #tpu.memory_space<vmem>>, vector<128x64xf32>
    %cst_5 = arith.constant dense<0.000000e+00> : vector<96x64xf32>
    %4 = tpu.matmul %0, %3, %cst_5 {dimension_numbers = #tpu.dot_dimension_numbers<[1], [0], [0], [1], [0, 0, 1, 1], [], []>} : vector<96x128xf32>, vector<128x64xf32>, vector<96x64xf32> -> vector<96x64xf32>
    %c0_6 = arith.constant 0 : index
    %c0_7 = arith.constant 0 : index
    %5 = vector.load %arg4[%c0_6, %c0_7] : memref<128x64xf32, #tpu.memory_space<vmem>>, vector<128x64xf32>
    %cst_8 = arith.constant dense<0.000000e+00> : vector<96x64xf32>
    %6 = tpu.matmul %0, %5, %cst_8 {dimension_numbers = #tpu.dot_dimension_numbers<[1], [0], [0], [1], [0, 0, 1, 1], [], []>} : vector<96x128xf32>, vector<128x64xf32>, vector<96x64xf32> -> vector<96x64xf32>
    %7 = vector.shape_cast %2 : vector<96x64xf32> to vector<12x8x64xf32>
    %8 = vector.shape_cast %4 : vector<96x64xf32> to vector<12x8x64xf32>
    %9 = vector.shape_cast %6 : vector<96x64xf32> to vector<12x8x64xf32>
    %c0_9 = arith.constant 0 : index
    %c0_10 = arith.constant 0 : index
    %10 = vector.load %arg5[%c0_9, %c0_10] : memref<64x64xf32, #tpu.memory_space<vmem>>, vector<64x64xf32>
    %11 = tpu.concatenate %8, %8, %8, %8, %8, %8, %8, %8 in 1 : vector<12x8x64xf32>, vector<12x8x64xf32>, vector<12x8x64xf32>, vector<12x8x64xf32>, vector<12x8x64xf32>, vector<12x8x64xf32>, vector<12x8x64xf32>, vector<12x8x64xf32> -> vector<12x64x64xf32>
    %12 = vector.shape_cast %10 : vector<64x64xf32> to vector<1x64x64xf32>
    %13 = vector.broadcast %12 : vector<1x64x64xf32> to vector<12x64x64xf32>
    %14 = arith.mulf %11, %13 : vector<12x64x64xf32>
    %15 = tpu.concatenate %9, %9, %9, %9, %9, %9, %9, %9 in 1 : vector<12x8x64xf32>, vector<12x8x64xf32>, vector<12x8x64xf32>, vector<12x8x64xf32>, vector<12x8x64xf32>, vector<12x8x64xf32>, vector<12x8x64xf32>, vector<12x8x64xf32> -> vector<12x64x64xf32>
    %16 = vector.shape_cast %10 : vector<64x64xf32> to vector<1x64x64xf32>
    %17 = vector.broadcast %16 : vector<1x64x64xf32> to vector<12x64x64xf32>
    %18 = arith.mulf %15, %17 : vector<12x64x64xf32>
    "tpu.trace_start"() <{level = 10 : i32, message = "gqd,ged->gqe"}> : () -> ()
    %cst_11 = arith.constant dense<0.000000e+00> : vector<12x8x64xf32>
    %19 = tpu.matmul %7, %14, %cst_11 {dimension_numbers = #tpu.dot_dimension_numbers<[2], [2], [1], [1], [0, 0, 0, 1, 1, 1], [0], [0]>} : vector<12x8x64xf32>, vector<12x64x64xf32>, vector<12x8x64xf32> -> vector<12x8x64xf32>
    "tpu.trace_stop"() : () -> ()
    %cst_12 = arith.constant dense<0xFF800000> : vector<12x8xf32>
    %20 = vector.multi_reduction <maximumf>, %19, %cst_12 [2] : vector<12x8x64xf32> to vector<12x8xf32>
    %21 = vector.shape_cast %20 : vector<12x8xf32> to vector<12x8x1xf32>
    %22 = vector.broadcast %21 : vector<12x8x1xf32> to vector<12x8x64xf32>
    %23 = arith.subf %19, %22 : vector<12x8x64xf32>
    %24 = math.exp %23 : vector<12x8x64xf32>
    "tpu.trace_start"() <{level = 10 : i32, message = "gqe,ged->gqd"}> : () -> ()
    %cst_13 = arith.constant dense<0.000000e+00> : vector<12x8x64xf32>
    %25 = tpu.matmul %24, %18, %cst_13 {dimension_numbers = #tpu.dot_dimension_numbers<[2], [1], [1], [2], [0, 0, 0, 1, 1, 2], [0], [0]>} : vector<12x8x64xf32>, vector<12x64x64xf32>, vector<12x8x64xf32> -> vector<12x8x64xf32>
    "tpu.trace_stop"() : () -> ()
    %26 = vector.shape_cast %25 : vector<12x8x64xf32> to vector<96x64xf32>
    %27 = vector.shape_cast %24 : vector<12x8x64xf32> to vector<96x64xf32>
    %cst_14 = arith.constant dense<0.000000e+00> : vector<96x64xf32>
    %28 = tpu.matmul %27, %10, %cst_14 {dimension_numbers = #tpu.dot_dimension_numbers<[1], [0], [0], [1], [0, 0, 1, 1], [], []>} : vector<96x64xf32>, vector<64x64xf32>, vector<96x64xf32> -> vector<96x64xf32>
    %29 = tpu.reciprocal %28 {approx = true} : vector<96x64xf32> -> vector<96x64xf32>
    %30 = arith.mulf %26, %29 : vector<96x64xf32>
    %c0_15 = arith.constant 0 : index
    %c0_16 = arith.constant 0 : index
    %31 = vector.load %arg7[%c0_15, %c0_16] : memref<96x64xf32, #tpu.memory_space<vmem>>, vector<96x64xf32>
    %32 = arith.mulf %30, %31 : vector<96x64xf32>
    %c0_17 = arith.constant 0 : index
    %c0_18 = arith.constant 0 : index
    %33 = vector.load %arg6[%c0_17, %c0_18] : memref<64x32xf32, #tpu.memory_space<vmem>>, vector<64x32xf32>
    %cst_19 = arith.constant dense<0.000000e+00> : vector<96x32xf32>
    %34 = tpu.matmul %32, %33, %cst_19 {dimension_numbers = #tpu.dot_dimension_numbers<[1], [0], [0], [1], [0, 0, 1, 1], [], []>} : vector<96x64xf32>, vector<64x32xf32>, vector<96x32xf32> -> vector<96x32xf32>
    %c0_20 = arith.constant 0 : index
    %c0_21 = arith.constant 0 : index
    %35 = vector.load %arg8[%c0_20, %c0_21] : memref<96x32xf32, #tpu.memory_space<vmem>>, vector<96x32xf32>
    %36 = arith.addf %34, %35 : vector<96x32xf32>
    %c0_22 = arith.constant 0 : index
    %c0_23 = arith.constant 0 : index
    %37 = vector.load %arg9[%c0_22, %c0_23] : memref<96x32xf32, #tpu.memory_space<vmem>>, vector<96x32xf32>
    %38 = vector.extract_strided_slice %0 {offsets = [0, 0], sizes = [96, 32], strides = [1, 1]} : vector<96x128xf32> to vector<96x32xf32>
    %39 = arith.mulf %37, %38 : vector<96x32xf32>
    %40 = arith.addf %36, %39 : vector<96x32xf32>
    %c0_24 = arith.constant 0 : index
    %c0_25 = arith.constant 0 : index
    %41 = vector.load %arg10[%c0_24, %c0_25] : memref<96x32xf32, #tpu.memory_space<vmem>>, vector<96x32xf32>
    tpu.vector_store %arg10[%c0_24, %c0_25], %40 {strides = array<i32>} : memref<96x32xf32, #tpu.memory_space<vmem>>, vector<96x32xf32>,
    return
  }
  func.func @transform_0(%arg0: i32) -> (i32, i32) {
    %c0_i32 = arith.constant 0 : i32
    %c0_i32_0 = arith.constant 0 : i32
    return %arg0, %c0_i32 : i32, i32
  }
  func.func @transform_1(%arg0: i32) -> (i32, i32) {
    %c0_i32 = arith.constant 0 : i32
    %c0_i32_0 = arith.constant 0 : i32
    %c0_i32_1 = arith.constant 0 : i32
    return %c0_i32, %c0_i32_0 : i32, i32
  }
  func.func @transform_2(%arg0: i32) -> (i32, i32) {
    %c0_i32 = arith.constant 0 : i32
    %c0_i32_0 = arith.constant 0 : i32
    %c0_i32_1 = arith.constant 0 : i32
    return %c0_i32, %c0_i32_0 : i32, i32
  }
  func.func @transform_3(%arg0: i32) -> (i32, i32) {
    %c0_i32 = arith.constant 0 : i32
    %c0_i32_0 = arith.constant 0 : i32
    %c0_i32_1 = arith.constant 0 : i32
    return %c0_i32, %c0_i32_0 : i32, i32
  }
  func.func @transform_4(%arg0: i32) -> (i32, i32) {
    %c0_i32 = arith.constant 0 : i32
    %c0_i32_0 = arith.constant 0 : i32
    %c0_i32_1 = arith.constant 0 : i32
    return %c0_i32, %c0_i32_0 : i32, i32
  }
  func.func @transform_5(%arg0: i32) -> (i32, i32) {
    %c0_i32 = arith.constant 0 : i32
    %c0_i32_0 = arith.constant 0 : i32
    %c0_i32_1 = arith.constant 0 : i32
    return %c0_i32, %c0_i32_0 : i32, i32
  }
  func.func @transform_6(%arg0: i32) -> (i32, i32) {
    %c0_i32 = arith.constant 0 : i32
    %c0_i32_0 = arith.constant 0 : i32
    return %arg0, %c0_i32 : i32, i32
  }
  func.func @transform_7(%arg0: i32) -> (i32, i32) {
    %c0_i32 = arith.constant 0 : i32
    %c0_i32_0 = arith.constant 0 : i32
    return %arg0, %c0_i32 : i32, i32
  }
  func.func @transform_8(%arg0: i32) -> (i32, i32) {
    %c0_i32 = arith.constant 0 : i32
    %c0_i32_0 = arith.constant 0 : i32
    return %arg0, %c0_i32 : i32, i32
  }
  func.func @transform_9(%arg0: i32) -> (i32, i32) {
    %c0_i32 = arith.constant 0 : i32
    %c0_i32_0 = arith.constant 0 : i32
    return %arg0, %c0_i32 : i32, i32
  }
}

</mosaic_0001>

<bundles_post_ra>
// kernel: tpu_custom_call.1
= control target key start
LH: loop header
LB: loop body
LE: loop exit
PB: predicated region body
PF: predicated region fallthrough
CT: control target
= control target key end

     0   :  { %v4415_v60 = vmov 0.0   ;;  %vm4416_vm0 = vmmov 0   ;;  %vm667_vm1 = vcmask 523264   ;;  %vm3170_vm2 = vcmask 261120   ;;  %s5817_s2 = inlined_call_operand.vmem [shape: f32[128,64], index: 2, kind: input, shape index: {}]   ;;  %s5818_s0 = inlined_call_operand.vmem [shape: f32[96,128], index: 0, kind: input, shape index: {}]   ;;  %s5819_s1 = inlined_call_operand.vmem [shape: f32[128,64], index: 1, kind: input, shape index: {}]   ;;  %s5820_s3 = inlined_call_operand.vmem [shape: f32[128,64], index: 3, kind: input, shape index: {}]   ;;  %s5821_s4 = inlined_call_operand.vmem [shape: f32[64,64], index: 4, kind: input, shape index: {}]   ;;  %s5822_s5 = inlined_call_operand.vmem [shape: f32[64,32], index: 5, kind: input, shape index: {}]   ;;  %s5823_s6 = inlined_call_operand.vmem [shape: f32[96,64], index: 6, kind: input, shape index: {}]   ;;  %s5824_s8 = inlined_call_operand.vmem [shape: f32[96,32], index: 8, kind: input, shape index: {}]   ;;  %s5825_s7 = inlined_call_operand.vmem [shape: f32[96,32], index: 7, kind: input, shape index: {}]   ;;  %s5826_s9 = inlined_call_operand.vmem [shape: f32[96,32], index: 9, kind: output, shape index: {}]  }
   0x1   :  { %v200_v0 = vld [vmem:[%s5817_s2 + $0x78] sm:$0xff]  ;;  %v199_v1 = vld [vmem:[%s5817_s2 + $0x70] sm:$0xff]  ;;  %v198_v2 = vld [vmem:[%s5817_s2 + $0x68] sm:$0xff] }
   0x2   :  { %3721 = vmatprep.subr.mxu1 %v200_v0  ;;  %v197_v3 = vld [vmem:[%s5817_s2 + $0x60] sm:$0xff]  ;;  %v59_v5 = vld [vmem:[%s5819_s1 + $0x78] sm:$0xff]  ;;  %v58_v7 = vld [vmem:[%s5819_s1 + $0x70] sm:$0xff] }
   0x3   :  { %3722 = vmatpush3.msra.mxu1 %v200_v0  ;;  %v4482_v4 = vld [vmem:[%s5818_s0] sm:$0xff]  ;;  %v196_v6 = vld [vmem:[%s5817_s2 + $0x58] sm:$0xff]  ;;  %3671 = vmatprep.subr.mxu0 %v59_v5  ;;  %v195_v8 = vld [vmem:[%s5817_s2 + $0x50] sm:$0xff] }
   0x4   :  { %3723 = vmatprep.subr.mxu1 %v199_v1  ;;  %3753 = vmatprep.mubr.f32.mxu1 %v4482_v4  ;;  %v57_v9 = vld [vmem:[%s5819_s1 + $0x68] sm:$0xff]  ;;  %v56_v11 = vld [vmem:[%s5819_s1 + $0x60] sm:$0xff]  ;;  %v55_v13 = vld [vmem:[%s5819_s1 + $0x58] sm:$0xff] }
   0x5   :  { %3724 = vmatpush3.msra.mxu1 %v199_v1  ;;  %3672 = vmatpush3.msra.mxu0 %v59_v5  ;;  %v194_v10 = vld [vmem:[%s5817_s2 + $0x48] sm:$0xff]  ;;  %v193_v12 = vld [vmem:[%s5817_s2 + $0x40] sm:$0xff]  ;;  %v192_v14 = vld [vmem:[%s5817_s2 + $0x38] sm:$0xff] }
   0x6   :  { %3725 = vmatprep.subr.mxu1 %v198_v2  ;;  %3673 = vmatprep.subr.mxu0 %v58_v7  ;;  %v54_v15 = vld [vmem:[%s5819_s1 + $0x50] sm:$0xff]  ;;  %v53_v17 = vld [vmem:[%s5819_s1 + $0x48] sm:$0xff]  ;;  %v52_v19 = vld [vmem:[%s5819_s1 + $0x40] sm:$0xff] }
   0x7   :  { %3726 = vmatpush3.msra.mxu1 %v198_v2  ;;  %3674 = vmatpush3.msra.mxu0 %v58_v7  ;;  %v191_v16 = vld [vmem:[%s5817_s2 + $0x30] sm:$0xff]  ;;  %v190_v18 = vld [vmem:[%s5817_s2 + $0x28] sm:$0xff]  ;;  %v189_v20 = vld [vmem:[%s5817_s2 + $0x20] sm:$0xff] }
   0x8   :  { %3727 = vmatprep.subr.mxu1 %v197_v3  ;;  %3675 = vmatprep.subr.mxu0 %v57_v9  ;;  %v51_v21 = vld [vmem:[%s5819_s1 + $0x38] sm:$0xff]  ;;  %v50_v23 = vld [vmem:[%s5819_s1 + $0x30] sm:$0xff]  ;;  %v49_v25 = vld [vmem:[%s5819_s1 + $0x28] sm:$0xff] }
   0x9   :  { %3728 = vmatpush3.msra.mxu1 %v197_v3  ;;  %3676 = vmatpush3.msra.mxu0 %v57_v9  ;;  %v188_v22 = vld [vmem:[%s5817_s2 + $0x18] sm:$0xff]  ;;  %v187_v24 = vld [vmem:[%s5817_s2 + $0x10] sm:$0xff]  ;;  %v186_v26 = vld [vmem:[%s5817_s2 + $0x8] sm:$0xff] }
   0xa   :  { %3729 = vmatprep.subr.mxu1 %v196_v6  ;;  %3677 = vmatprep.subr.mxu0 %v56_v11  ;;  %v48_v27 = vld [vmem:[%s5819_s1 + $0x20] sm:$0xff]  ;;  %v47_v29 = vld [vmem:[%s5819_s1 + $0x18] sm:$0xff]  ;;  %v4563_v30 = vld [vmem:[%s5818_s0 + $0x8] sm:$0xff] }
   0xb   :  { %3730 = vmatpush3.msra.mxu1 %v196_v6  ;;  %3678 = vmatpush3.msra.mxu0 %v56_v11  ;;  %v185_v28 = vld [vmem:[%s5817_s2] sm:$0xff]  ;;  %v46_v31 = vld [vmem:[%s5819_s1 + $0x10] sm:$0xff]  ;;  %v45_v33 = vld [vmem:[%s5819_s1 + $0x8] sm:$0xff] }
   0xc   :  { %3731 = vmatprep.subr.mxu1 %v195_v8  ;;  %3679 = vmatprep.subr.mxu0 %v55_v13  ;;  %v4571_v32 = vld [vmem:[%s5818_s0 + $0x10] sm:$0xff]  ;;  %v44_v34 = vld [vmem:[%s5819_s1] sm:$0xff]  ;;  %v4584_v35 = vld [vmem:[%s5818_s0 + $0x18] sm:$0xff] }
   0xd   :  { %3732 = vmatpush3.msra.mxu1 %v195_v8  ;;  %3680 = vmatpush3.msra.mxu0 %v55_v13  ;;  %v4590_v36 = vld [vmem:[%s5818_s0 + $0x20] sm:$0xff]  ;;  %v341_v37 = vld [vmem:[%s5820_s3 + $0x78] sm:$0xff]  ;;  %v4600_v38 = vld [vmem:[%s5818_s0 + $0x28] sm:$0xff] }
   0xe   :  { %3733 = vmatprep.subr.mxu1 %v194_v10  ;;  %3681 = vmatprep.subr.mxu0 %v54_v15  ;;  %v340_v39 = vld [vmem:[%s5820_s3 + $0x70] sm:$0xff]  ;;  %v339_v41 = vld [vmem:[%s5820_s3 + $0x68] sm:$0xff]  ;;  %v4620_v42 = vld [vmem:[%s5818_s0 + $0x38] sm:$0xff] }
   0xf   :  { %3734 = vmatpush3.msra.mxu1 %v194_v10  ;;  %3682 = vmatpush3.msra.mxu0 %v54_v15  ;;  %v4609_v40 = vld [vmem:[%s5818_s0 + $0x30] sm:$0xff]  ;;  %v338_v43 = vld [vmem:[%s5820_s3 + $0x60] sm:$0xff]  ;;  %v337_v45 = vld [vmem:[%s5820_s3 + $0x58] sm:$0xff] }
  0x10   :  { %3735 = vmatprep.subr.mxu1 %v193_v12  ;;  %3683 = vmatprep.subr.mxu0 %v53_v17  ;;  %v4629_v44 = vld [vmem:[%s5818_s0 + $0x40] sm:$0xff]  ;;  %v41_v46 = vld [vmem:[%s5818_s0 + $0x48] sm:$0xff]  ;;  %v336_v47 = vld [vmem:[%s5820_s3 + $0x50] sm:$0xff] }
  0x11   :  { %3736 = vmatpush3.msra.mxu1 %v193_v12  ;;  %3684 = vmatpush3.msra.mxu0 %v53_v17  ;;  %v42_v48 = vld [vmem:[%s5818_s0 + $0x50] sm:$0xff]  ;;  %v335_v49 = vld [vmem:[%s5820_s3 + $0x48] sm:$0xff]  ;;  %v43_v50 = vld [vmem:[%s5818_s0 + $0x58] sm:$0xff] }
  0x12   :  { %3737 = vmatprep.subr.mxu1 %v192_v14  ;;  %3685 = vmatprep.subr.mxu0 %v52_v19  ;;  %v334_v51 = vld [vmem:[%s5820_s3 + $0x40] sm:$0xff]  ;;  %v333_v52 = vld [vmem:[%s5820_s3 + $0x38] sm:$0xff]  ;;  %v332_v53 = vld [vmem:[%s5820_s3 + $0x30] sm:$0xff] }
  0x13   :  { %3738 = vmatpush3.msra.mxu1 %v192_v14  ;;  %3686 = vmatpush3.msra.mxu0 %v52_v19  ;;  %v331_v54 = vld [vmem:[%s5820_s3 + $0x28] sm:$0xff]  ;;  %v330_v55 = vld [vmem:[%s5820_s3 + $0x20] sm:$0xff]  ;;  %v329_v56 = vld [vmem:[%s5820_s3 + $0x18] sm:$0xff] }
  0x14   :  { %3739 = vmatprep.subr.mxu1 %v191_v16  ;;  %3687 = vmatprep.subr.mxu0 %v51_v21  ;;  %v328_v57 = vld [vmem:[%s5820_s3 + $0x10] sm:$0xff]  ;;  %v327_v58 = vld [vmem:[%s5820_s3 + $0x8] sm:$0xff]  ;;  %v326_v59 = vld [vmem:[%s5820_s3] sm:$0xff] }
  0x15   :  { %3740 = vmatpush3.msra.mxu1 %v191_v16  ;;  %3688 = vmatpush3.msra.mxu0 %v51_v21  ;;  %v4701_v61 = vld [vmem:[%s5821_s4 + $0x38] sm:$0xff]  ;;  %v4707_v1 = vld [vmem:[%s5821_s4 + $0x30] sm:$0xff]  ;;  %v4729_v7 = vld [vmem:[%s5821_s4 + $0x20] sm:$0xff] }
  0x16   :  { %3741 = vmatprep.subr.mxu1 %v190_v18  ;;  %3689 = vmatprep.subr.mxu0 %v50_v23  ;;  %v4740_v10 = vld [vmem:[%s5821_s4 + $0x18] sm:$0xff]  ;;  %v4751_v13 = vld [vmem:[%s5821_s4 + $0x10] sm:$0xff]  ;;  %v4762_v16 = vld [vmem:[%s5821_s4 + $0x8] sm:$0xff] }
  0x17   :  { %3742 = vmatpush3.msra.mxu1 %v190_v18  ;;  %3690 = vmatpush3.msra.mxu0 %v50_v23  ;;  %v4773_v19 = vld [vmem:[%s5821_s4] sm:$0xff] }
  0x18   :  { %3743 = vmatprep.subr.mxu1 %v189_v20  ;;  %3691 = vmatprep.subr.mxu0 %v49_v25 }
  0x19   :  { %3744 = vmatpush3.msra.mxu1 %v189_v20  ;;  %3692 = vmatpush3.msra.mxu0 %v49_v25 }
  0x1a   :  { %3745 = vmatprep.subr.mxu1 %v188_v22  ;;  %3693 = vmatprep.subr.mxu0 %v48_v27 }
  0x1b   :  { %3746 = vmatpush3.msra.mxu1 %v188_v22  ;;  %3694 = vmatpush3.msra.mxu0 %v48_v27 }
  0x1c   :  { %3747 = vmatprep.subr.mxu1 %v187_v24  ;;  %3695 = vmatprep.subr.mxu0 %v47_v29 }
  0x1d   :  { %3748 = vmatpush3.msra.mxu1 %v187_v24  ;;  %3696 = vmatpush3.msra.mxu0 %v47_v29 }
  0x1e   :  { %3749 = vmatprep.subr.mxu1 %v186_v26  ;;  %3697 = vmatprep.subr.mxu0 %v46_v31 }
  0x1f   :  { %3750 = vmatpush3.msra.mxu1 %v186_v26  ;;  %3698 = vmatpush3.msra.mxu0 %v46_v31 }
  0x20   :  { %3751 = vmatprep.subr.mxu1 %v185_v28  ;;  %3699 = vmatprep.subr.mxu0 %v45_v33 }
  0x21   :  { %3752 = vmatpush3.msra.mxu1 %v185_v28  ;;  %3703 = vmatprep.mubr.f32.mxu0 %v4482_v4 }
  0x22   :  { %3754 = vmatmul.mubr.f32.vlgmr.msra.gmra.mxu1 %v4563_v30  ;;  %3700 = vmatpush3.msra.mxu0 %v45_v33 }
  0x23   :  { %3756 = vmatprep.mubr.f32.mxu1 %v4571_v32  ;;  %3701 = vmatprep.subr.mxu0 %v44_v34 }
  0x24   :  { %3702 = vmatpush3.msra.mxu0 %v44_v34  ;;  %3821 = vmatprep.subr.mxu1 %v4415_v60 }
  0x25   :  { %3704 = vmatmul.mubr.f32.vlgmr.msra.gmra.mxu0 %v4563_v30  ;;  %3771 = vmatprep.subr.mxu0 %v341_v37 }
  0x26   :  { %3757 = vmatmul.mubr.f32.gmra.mxu1 %v4584_v35  ;;  %3706 = vmatprep.mubr.f32.mxu0 %v4571_v32 }
  0x27   :  { %3759 = vmatprep.mubr.f32.mxu1 %v4590_v36  ;;  %3772 = vmatpush3.msra.mxu0 %v341_v37 }
  0x28   :  { %3773 = vmatprep.subr.mxu0 %v340_v39 }
  0x29   :  { %3774 = vmatpush3.msra.mxu0 %v340_v39 }
  0x2a   :  { %3760 = vmatmul.mubr.f32.gmra.mxu1 %v4600_v38  ;;  %3707 = vmatmul.mubr.f32.gmra.mxu0 %v4584_v35 }
  0x2b   :  { %3762 = vmatprep.mubr.f32.mxu1 %v4609_v40  ;;  %3775 = vmatprep.subr.mxu0 %v339_v41 }
  0x2c   :  { %3709 = vmatprep.mubr.f32.mxu0 %v4590_v36  ;;  %3776 = vmatpush3.msra.mxu0 %v339_v41 }
  0x2d   :  { %3777 = vmatprep.subr.mxu0 %v338_v43 }
  0x2e   :  { %3763 = vmatmul.mubr.f32.gmra.mxu1 %v4620_v42  ;;  %3778 = vmatpush3.msra.mxu0 %v338_v43 }
  0x2f   :  { %3765 = vmatprep.mubr.f32.mxu1 %v4629_v44  ;;  %3710 = vmatmul.mubr.f32.gmra.mxu0 %v4600_v38 }
  0x30   :  { %3779 = vmatprep.subr.mxu0 %v337_v45  ;;  %3712 = vmatprep.mubr.f32.mxu0 %v4609_v40 }
  0x31   :  { %3780 = vmatpush3.msra.mxu0 %v337_v45 }
  0x32   :  { %3766 = vmatmul.mubr.f32.gmra.mxu1 %v41_v46  ;;  %3781 = vmatprep.subr.mxu0 %v336_v47 }
  0x33   :  { %3768 = vmatprep.mubr.f32.mxu1 %v42_v48  ;;  %3782 = vmatpush3.msra.mxu0 %v336_v47 }
  0x34   :  { %3713 = vmatmul.mubr.f32.gmra.mxu0 %v4620_v42  ;;  %3783 = vmatprep.subr.mxu0 %v335_v49 }
  0x35   :  { %3715 = vmatprep.mubr.f32.mxu0 %v4629_v44  ;;  %3784 = vmatpush3.msra.mxu0 %v335_v49 }
  0x36   :  { %3769 = vmatmul.mubr.f32.gmra.mxu1 %v43_v50  ;;  %3785 = vmatprep.subr.mxu0 %v334_v51 }
  0x37   :  { %3786 = vmatpush3.msra.mxu0 %v334_v51  ;;  %3837 = vmatprep.mubr.msk.f32.mxu1 %vm4416_vm0, %v4415_v60 }
  0x38   :  { %3716 = vmatmul.mubr.f32.gmra.mxu0 %v41_v46  ;;  %3787 = vmatprep.subr.mxu0 %v333_v52 }
  0x39   :  { %3788 = vmatpush3.msra.mxu0 %v333_v52  ;;  %3718 = vmatprep.mubr.f32.mxu0 %v42_v48 }
  0x3a   :  { %3789 = vmatprep.subr.mxu0 %v332_v53 }
  0x3b   :  { %3790 = vmatpush3.msra.mxu0 %v332_v53 }
  0x3c   :  { %3791 = vmatprep.subr.mxu0 %v331_v54  ;;  %3719 = vmatmul.mubr.f32.gmra.mxu0 %v43_v50 }
  0x3d   :  { %3792 = vmatpush3.msra.mxu0 %v331_v54  ;;  %3803 = vmatprep.mubr.f32.mxu0 %v4482_v4  ;;  %v4718_v4 = vld [vmem:[%s5821_s4 + $0x28] sm:$0xff] }
  0x3e   :  { %3793 = vmatprep.subr.mxu0 %v330_v55 }
  0x3f   :  { %3794 = vmatpush3.msra.mxu0 %v330_v55 }
  0x40   :  { %3795 = vmatprep.subr.mxu0 %v329_v56 }
  0x41   :  { %3796 = vmatpush3.msra.mxu0 %v329_v56 }
  0x42   :  { %3797 = vmatprep.subr.mxu0 %v328_v57 }
  0x43   :  { %3798 = vmatpush3.msra.mxu0 %v328_v57 }
  0x44   :  { %3799 = vmatprep.subr.mxu0 %v327_v58 }
  0x45   :  { %3800 = vmatpush3.msra.mxu0 %v327_v58 }
  0x46   :  { %3801 = vmatprep.subr.mxu0 %v326_v59 }
  0x47   :  { %3802 = vmatpush3.msra.mxu0 %v326_v59 }
  0x48   :  { %3840 = vmatprep.subr.mxu0 %v4415_v60  ;;  %3804 = vmatmul.mubr.f32.vlgmr.msra.gmra.mxu0 %v4563_v30 }
  0x49   :  { %3806 = vmatprep.mubr.f32.mxu0 %v4571_v32 }
  0x4c   :  { %3807 = vmatmul.mubr.f32.gmra.mxu0 %v4584_v35 }
  0x4d   :  { %3809 = vmatprep.mubr.f32.mxu0 %v4590_v36 }
  0x50   :  { %3810 = vmatmul.mubr.f32.gmra.mxu0 %v4600_v38 }
  0x51   :  { %3812 = vmatprep.mubr.f32.mxu0 %v4609_v40 }
  0x54   :  { %3813 = vmatmul.mubr.f32.gmra.mxu0 %v4620_v42 }
  0x55   :  { %3815 = vmatprep.mubr.f32.mxu0 %v4629_v44 }
  0x58   :  { %3816 = vmatmul.mubr.f32.gmra.mxu0 %v41_v46 }
  0x59   :  { %3818 = vmatprep.mubr.f32.mxu0 %v42_v48 }
  0x5c   :  { %3819 = vmatmul.mubr.f32.gmra.mxu0 %v43_v50 }
  0x5d   :  { %3856 = vmatprep.mubr.msk.f32.mxu0 %vm4416_vm0, %v4415_v60 }
  0xe2   :  { %v3755_v62 = vpop.f32.mrf.mxu1 }
  0xe3   :  { %v490_v63 = vmul.f32 %v3755_v62, %v4701_v61  ;;  %v489_v3 = vmul.f32 %v3755_v62, %v4707_v1  ;;  %v488_v6 = vmul.f32 %v3755_v62, %v4718_v4  ;;  %v487_v9 = vmul.f32 %v3755_v62, %v4729_v7 }
  0xe4   :  { %v267_v0 = vpop.f32.mrf.mxu1  ;;  %v486_v12 = vmul.f32 %v3755_v62, %v4740_v10  ;;  %v485_v15 = vmul.f32 %v3755_v62, %v4751_v13  ;;  %v484_v18 = vmul.f32 %v3755_v62, %v4762_v16  ;;  %v483_v22 = vmul.f32 %v3755_v62, %v4773_v19 }
  0xe5   :  { %3841 = vmatpush3.xpose.msk.msra.mxu0 %vm667_vm1, %v490_v63  ;;  %v482_v2 = vmul.f32 %v4701_v61, %v267_v0  ;;  %v481_v5 = vmul.f32 %v4707_v1, %v267_v0  ;;  %v480_v8 = vmul.f32 %v4718_v4, %v267_v0  ;;  %v479_v11 = vmul.f32 %v4729_v7, %v267_v0  ;;  %v3705_v23 = vpop.f32.mrf.mxu0 }
  0xe6   :  { %3842 = vmatprep.subr.mxu0 %v4415_v60  ;;  %v478_v14 = vmul.f32 %v4740_v10, %v267_v0  ;;  %v477_v17 = vmul.f32 %v4751_v13, %v267_v0  ;;  %v476_v20 = vmul.f32 %v4762_v16, %v267_v0  ;;  %v3758_v21 = vpop.f32.mrf.mxu1  ;;  %v475_v24 = vmul.f32 %v4773_v19, %v267_v0 }
  0xe7   :  { %3822 = vmatpush3.xpose.msk.msra.mxu1 %vm667_vm1, %v482_v2  ;;  %v506_v25 = vmul.f32 %v3758_v21, %v4701_v61  ;;  %v126_v27 = vpop.f32.mrf.mxu0  ;;  %v505_v29 = vmul.f32 %v3758_v21, %v4707_v1  ;;  %v504_v31 = vmul.f32 %v3758_v21, %v4718_v4  ;;  %v503_v33 = vmul.f32 %v3758_v21, %v4729_v7 }
  0xe8   :  { %3823 = vmatprep.subr.mxu1 %v4415_v60  ;;  %v277_v26 = vpop.f32.mrf.mxu1  ;;  %v502_v35 = vmul.f32 %v3758_v21, %v4740_v10  ;;  %v501_v37 = vmul.f32 %v3758_v21, %v4751_v13  ;;  %v500_v39 = vmul.f32 %v3758_v21, %v4762_v16  ;;  %v499_v42 = vmul.f32 %v3758_v21, %v4773_v19 }
  0xe9   :  { %3843 = vmatpush3.xpose.msk.msra.mxu0 %vm667_vm1, %v489_v3  ;;  %v498_v28 = vmul.f32 %v4701_v61, %v277_v26  ;;  %v497_v30 = vmul.f32 %v4707_v1, %v277_v26  ;;  %v496_v32 = vmul.f32 %v4718_v4, %v277_v26  ;;  %v495_v34 = vmul.f32 %v4729_v7, %v277_v26 }
  0xea   :  { %3844 = vmatprep.subr.mxu0 %v4415_v60  ;;  %v494_v36 = vmul.f32 %v4740_v10, %v277_v26  ;;  %v493_v38 = vmul.f32 %v4751_v13, %v277_v26  ;;  %v492_v40 = vmul.f32 %v4762_v16, %v277_v26  ;;  %v3761_v41 = vpop.f32.mrf.mxu1  ;;  %v3708_v43 = vpop.f32.mrf.mxu0  ;;  %v491_v44 = vmul.f32 %v4773_v19, %v277_v26 }
  0xeb   :  { %3824 = vmatpush3.xpose.msk.msra.mxu1 %vm667_vm1, %v481_v5  ;;  %v522_v45 = vmul.f32 %v3761_v41, %v4701_v61  ;;  %v521_v49 = vmul.f32 %v3761_v41, %v4707_v1  ;;  %v520_v51 = vmul.f32 %v3761_v41, %v4718_v4  ;;  %v519_v53 = vmul.f32 %v3761_v41, %v4729_v7 }
  0xec   :  { %3825 = vmatprep.subr.mxu1 %v4415_v60  ;;  %v287_v46 = vpop.f32.mrf.mxu1  ;;  %v136_v47 = vpop.f32.mrf.mxu0  ;;  %v518_v55 = vmul.f32 %v3761_v41, %v4740_v10  ;;  %v517_v57 = vmul.f32 %v3761_v41, %v4751_v13  ;;  %v516_v59 = vmul.f32 %v3761_v41, %v4762_v16  ;;  %v515_v0 = vmul.f32 %v3761_v41, %v4773_v19 }
  0xed   :  { %3845 = vmatpush3.xpose.msk.msra.mxu0 %vm667_vm1, %v488_v6  ;;  %v514_v48 = vmul.f32 %v4701_v61, %v287_v46  ;;  %v513_v50 = vmul.f32 %v4707_v1, %v287_v46  ;;  %v512_v52 = vmul.f32 %v4718_v4, %v287_v46  ;;  %v511_v54 = vmul.f32 %v4729_v7, %v287_v46 }
  0xee   :  { %3846 = vmatprep.subr.mxu0 %v4415_v60  ;;  %v510_v56 = vmul.f32 %v4740_v10, %v287_v46  ;;  %v509_v58 = vmul.f32 %v4751_v13, %v287_v46  ;;  %v508_v62 = vmul.f32 %v4762_v16, %v287_v46  ;;  %v3764_v63 = vpop.f32.mrf.mxu1  ;;  %v507_v3 = vmul.f32 %v4773_v19, %v287_v46 }
  0xef   :  { %3826 = vmatpush3.xpose.msk.msra.mxu1 %vm667_vm1, %v480_v8  ;;  %v3711_v2 = vpop.f32.mrf.mxu0  ;;  %v538_v5 = vmul.f32 %v3764_v63, %v4701_v61 }
  0xf0   :  { %3827 = vmatprep.subr.mxu1 %v4415_v60  ;;  %v297_v6 = vpop.f32.mrf.mxu1 }
  0xf1   :  { %3847 = vmatpush3.xpose.msk.msra.mxu0 %vm667_vm1, %v487_v9  ;;  %v146_v8 = vpop.f32.mrf.mxu0  ;;  %v530_v9 = vmul.f32 %v4701_v61, %v297_v6  ;;  %v526_v21 = vmul.f32 %v4740_v10, %v297_v6 }
  0xf2   :  { %3848 = vmatprep.subr.mxu0 %v4415_v60  ;;  %v3767_v26 = vpop.f32.mrf.mxu1 }
  0xf3   :  { %3828 = vmatpush3.xpose.msk.msra.mxu1 %vm667_vm1, %v479_v11  ;;  %v537_v11 = vmul.f32 %v3764_v63, %v4707_v1 }
  0xf4   :  { %3829 = vmatprep.subr.mxu1 %v4415_v60 }
  0xf5   :  { %3849 = vmatpush3.xpose.msk.msra.mxu0 %vm667_vm1, %v486_v12  ;;  %v529_v12 = vmul.f32 %v4707_v1, %v297_v6 }
  0xf6   :  { %3850 = vmatprep.subr.mxu0 %v4415_v60 }
  0xf7   :  { %3830 = vmatpush3.xpose.msk.msra.mxu1 %vm667_vm1, %v478_v14  ;;  %v536_v14 = vmul.f32 %v3764_v63, %v4718_v4 }
  0xf8   :  { %3831 = vmatprep.subr.mxu1 %v4415_v60 }
  0xf9   :  { %3851 = vmatpush3.xpose.msk.msra.mxu0 %vm667_vm1, %v485_v15  ;;  %v528_v15 = vmul.f32 %v4718_v4, %v297_v6 }
  0xfa   :  { %3852 = vmatprep.subr.mxu0 %v4415_v60 }
  0xfb   :  { %3832 = vmatpush3.xpose.msk.msra.mxu1 %vm667_vm1, %v477_v17  ;;  %v535_v17 = vmul.f32 %v3764_v63, %v4729_v7 }
  0xfc   :  { %3833 = vmatprep.subr.mxu1 %v4415_v60 }
  0xfd   :  { %3853 = vmatpush3.xpose.msk.msra.mxu0 %vm667_vm1, %v484_v18  ;;  %v527_v18 = vmul.f32 %v4729_v7, %v297_v6 }
  0xfe   :  { %3854 = vmatprep.subr.mxu0 %v4415_v60 }
  0xff   :  { %3834 = vmatpush3.xpose.msk.msra.mxu1 %vm667_vm1, %v476_v20  ;;  %v534_v20 = vmul.f32 %v3764_v63, %v4740_v10 }
 0x100   :  { %3835 = vmatprep.subr.mxu1 %v4415_v60 }
 0x101   :  { %3855 = vmatpush3.xpose.msk.msra.mxu0 %vm667_vm1, %v483_v22  ;;  %v533_v22 = vmul.f32 %v3764_v63, %v4751_v13 }
 0x102   :  { %3878 = vmatprep.subr.mxu0 %v4415_v60 }
 0x103   :  { %3836 = vmatpush3.xpose.msk.msra.mxu1 %vm667_vm1, %v475_v24  ;;  %v532_v24 = vmul.f32 %v3764_v63, %v4762_v16 }
 0x104   :  { %3857 = vmatmul.mubr.msk.f32.vlgmr.msra.gmra.mxu0 %vm667_vm1, %v3705_v23  ;;  %3859 = vmatprep.subr.mxu1 %v4415_v60  ;;  %v525_v23 = vmul.f32 %v4751_v13, %v297_v6 }
 0x105   :  { %3879 = vmatpush3.xpose.msk.msra.mxu0 %vm667_vm1, %v506_v25  ;;  %3894 = vmatprep.mubr.msk.f32.mxu0 %vm4416_vm0, %v4415_v60  ;;  %v524_v25 = vmul.f32 %v4762_v16, %v297_v6 }
 0x106   :  { %3838 = vmatmul.mubr.msk.f32.vlgmr.msra.gmra.mxu1 %vm667_vm1, %v126_v27  ;;  %3880 = vmatprep.subr.mxu0 %v4415_v60  ;;  %v531_v27 = vmul.f32 %v3764_v63, %v4773_v19 }
 0x107   :  { %3860 = vmatpush3.xpose.msk.msra.mxu1 %vm667_vm1, %v498_v28  ;;  %3875 = vmatprep.mubr.msk.f32.mxu1 %vm4416_vm0, %v4415_v60  ;;  %v3714_v28 = vpop.f32.mrf.mxu0 }
 0x108   :  { %3861 = vmatprep.subr.mxu1 %v4415_v60 }
 0x109   :  { %3881 = vmatpush3.xpose.msk.msra.mxu0 %vm667_vm1, %v505_v29  ;;  %v523_v29 = vmul.f32 %v4773_v19, %v297_v6 }
 0x10a   :  { %3882 = vmatprep.subr.mxu0 %v4415_v60 }
 0x10b   :  { %3862 = vmatpush3.xpose.msk.msra.mxu1 %vm667_vm1, %v497_v30  ;;  %v554_v30 = vmul.f32 %v3767_v26, %v4701_v61 }
 0x10c   :  { %3863 = vmatprep.subr.mxu1 %v4415_v60 }
 0x10d   :  { %3883 = vmatpush3.xpose.msk.msra.mxu0 %vm667_vm1, %v504_v31  ;;  %v307_v31 = vpop.f32.mrf.mxu1 }
 0x10e   :  { %3884 = vmatprep.subr.mxu0 %v4415_v60  ;;  %v542_v41 = vmul.f32 %v4740_v10, %v307_v31 }
 0x10f   :  { %3864 = vmatpush3.xpose.msk.msra.mxu1 %vm667_vm1, %v496_v32  ;;  %v156_v32 = vpop.f32.mrf.mxu0  ;;  %v4993_v46 = vpop.f32.mrf.mxu1 }
 0x110   :  { %3865 = vmatprep.subr.mxu1 %v4415_v60 }
 0x111   :  { %3885 = vmatpush3.xpose.msk.msra.mxu0 %vm667_vm1, %v503_v33  ;;  %v546_v33 = vmul.f32 %v4701_v61, %v307_v31 }
 0x112   :  { %3886 = vmatprep.subr.mxu0 %v4415_v60 }
 0x113   :  { %3866 = vmatpush3.xpose.msk.msra.mxu1 %vm667_vm1, %v495_v34  ;;  %v553_v34 = vmul.f32 %v3767_v26, %v4707_v1 }
 0x114   :  { %3867 = vmatprep.subr.mxu1 %v4415_v60 }
 0x115   :  { %3887 = vmatpush3.xpose.msk.msra.mxu0 %vm667_vm1, %v502_v35  ;;  %v545_v35 = vmul.f32 %v4707_v1, %v307_v31 }
 0x116   :  { %3888 = vmatprep.subr.mxu0 %v4415_v60 }
 0x117   :  { %3868 = vmatpush3.xpose.msk.msra.mxu1 %vm667_vm1, %v494_v36  ;;  %v552_v36 = vmul.f32 %v3767_v26, %v4718_v4 }
 0x118   :  { %3869 = vmatprep.subr.mxu1 %v4415_v60 }
 0x119   :  { %3889 = vmatpush3.xpose.msk.msra.mxu0 %vm667_vm1, %v501_v37  ;;  %v544_v37 = vmul.f32 %v4718_v4, %v307_v31 }
 0x11a   :  { %3890 = vmatprep.subr.mxu0 %v4415_v60 }
 0x11b   :  { %3870 = vmatpush3.xpose.msk.msra.mxu1 %vm667_vm1, %v493_v38  ;;  %v551_v38 = vmul.f32 %v3767_v26, %v4729_v7 }
 0x11c   :  { %3871 = vmatprep.subr.mxu1 %v4415_v60 }
 0x11d   :  { %3891 = vmatpush3.xpose.msk.msra.mxu0 %vm667_vm1, %v500_v39  ;;  %v543_v39 = vmul.f32 %v4729_v7, %v307_v31 }
 0x11e   :  { %3892 = vmatprep.subr.mxu0 %v4415_v60 }
 0x11f   :  { %3872 = vmatpush3.xpose.msk.msra.mxu1 %vm667_vm1, %v492_v40  ;;  %v550_v40 = vmul.f32 %v3767_v26, %v4740_v10 }
 0x120   :  { %3873 = vmatprep.subr.mxu1 %v4415_v60 }
 0x121   :  { %3893 = vmatpush3.xpose.msk.msra.mxu0 %vm667_vm1, %v499_v42  ;;  %v549_v42 = vmul.f32 %v3767_v26, %v4751_v13 }
 0x122   :  { %3916 = vmatprep.subr.mxu0 %v4415_v60 }
 0x123   :  { %3874 = vmatpush3.xpose.msk.msra.mxu1 %vm667_vm1, %v491_v44  ;;  %v548_v44 = vmul.f32 %v3767_v26, %v4762_v16 }
 0x124   :  { %3895 = vmatmul.mubr.msk.f32.vlgmr.msra.gmra.mxu0 %vm667_vm1, %v3708_v43  ;;  %3897 = vmatprep.subr.mxu1 %v4415_v60  ;;  %v541_v43 = vmul.f32 %v4751_v13, %v307_v31 }
 0x125   :  { %3917 = vmatpush3.xpose.msk.msra.mxu0 %vm667_vm1, %v522_v45  ;;  %3932 = vmatprep.mubr.msk.f32.mxu0 %vm4416_vm0, %v4415_v60  ;;  %v540_v45 = vmul.f32 %v4762_v16, %v307_v31 }
 0x126   :  { %3876 = vmatmul.mubr.msk.f32.vlgmr.msra.gmra.mxu1 %vm667_vm1, %v136_v47  ;;  %3918 = vmatprep.subr.mxu0 %v4415_v60  ;;  %v547_v47 = vmul.f32 %v3767_v26, %v4773_v19 }
 0x127   :  { %3898 = vmatpush3.xpose.msk.msra.mxu1 %vm667_vm1, %v514_v48  ;;  %3913 = vmatprep.mubr.msk.f32.mxu1 %vm4416_vm0, %v4415_v60  ;;  %v3717_v48 = vpop.f32.mrf.mxu0 }
 0x128   :  { %3899 = vmatprep.subr.mxu1 %v4415_v60 }
 0x129   :  { %3919 = vmatpush3.xpose.msk.msra.mxu0 %vm667_vm1, %v521_v49  ;;  %v539_v49 = vmul.f32 %v4773_v19, %v307_v31 }
 0x12a   :  { %3920 = vmatprep.subr.mxu0 %v4415_v60 }
 0x12b   :  { %3900 = vmatpush3.xpose.msk.msra.mxu1 %vm667_vm1, %v513_v50  ;;  %v570_v50 = vmul.f32 %v4993_v46, %v4701_v61 }
 0x12c   :  { %3901 = vmatprep.subr.mxu1 %v4415_v60 }
 0x12d   :  { %3921 = vmatpush3.xpose.msk.msra.mxu0 %vm667_vm1, %v520_v51  ;;  %v317_v51 = vpop.f32.mrf.mxu1 }
 0x12e   :  { %3922 = vmatprep.subr.mxu0 %v4415_v60 }
 0x12f   :  { %3902 = vmatpush3.xpose.msk.msra.mxu1 %vm667_vm1, %v512_v52  ;;  %v166_v52 = vpop.f32.mrf.mxu0 }
 0x130   :  { %3903 = vmatprep.subr.mxu1 %v4415_v60 }
 0x131   :  { %3923 = vmatpush3.xpose.msk.msra.mxu0 %vm667_vm1, %v519_v53  ;;  %v562_v53 = vmul.f32 %v4701_v61, %v317_v51 }
 0x132   :  { %3924 = vmatprep.subr.mxu0 %v4415_v60 }
 0x133   :  { %3904 = vmatpush3.xpose.msk.msra.mxu1 %vm667_vm1, %v511_v54  ;;  %v569_v54 = vmul.f32 %v4993_v46, %v4707_v1 }
 0x134   :  { %3905 = vmatprep.subr.mxu1 %v4415_v60 }
 0x135   :  { %3925 = vmatpush3.xpose.msk.msra.mxu0 %vm667_vm1, %v518_v55  ;;  %v561_v55 = vmul.f32 %v4707_v1, %v317_v51 }
 0x136   :  { %3926 = vmatprep.subr.mxu0 %v4415_v60 }
 0x137   :  { %3906 = vmatpush3.xpose.msk.msra.mxu1 %vm667_vm1, %v510_v56  ;;  %v568_v56 = vmul.f32 %v4993_v46, %v4718_v4 }
 0x138   :  { %3907 = vmatprep.subr.mxu1 %v4415_v60 }
 0x139   :  { %3927 = vmatpush3.xpose.msk.msra.mxu0 %vm667_vm1, %v517_v57  ;;  %v560_v57 = vmul.f32 %v4718_v4, %v317_v51 }
 0x13a   :  { %3928 = vmatprep.subr.mxu0 %v4415_v60 }
 0x13b   :  { %3908 = vmatpush3.xpose.msk.msra.mxu1 %vm667_vm1, %v509_v58  ;;  %v3720_v58 = vpop.f32.mrf.mxu0 }
 0x13c   :  { %3909 = vmatprep.subr.mxu1 %v4415_v60 }
 0x13d   :  { %3929 = vmatpush3.xpose.msk.msra.mxu0 %vm667_vm1, %v516_v59  ;;  %v567_v59 = vmul.f32 %v4993_v46, %v4729_v7  ;;  %v176_v63 = vpop.f32.mrf.mxu0 }
 0x13e   :  { %3930 = vmatprep.subr.mxu0 %v4415_v60 }
 0x13f   :  { %3910 = vmatpush3.xpose.msk.msra.mxu1 %vm667_vm1, %v508_v62  ;;  %v559_v62 = vmul.f32 %v4729_v7, %v317_v51 }
 0x140   :  { %3911 = vmatprep.subr.mxu1 %v4415_v60 }
 0x141   :  { %3931 = vmatpush3.xpose.msk.msra.mxu0 %vm667_vm1, %v515_v0  ;;  %v566_v0 = vmul.f32 %v4993_v46, %v4740_v10 }
 0x142   :  { %3954 = vmatprep.subr.mxu0 %v4415_v60 }
 0x143   :  { %3912 = vmatpush3.xpose.msk.msra.mxu1 %vm667_vm1, %v507_v3  ;;  %v558_v3 = vmul.f32 %v4740_v10, %v317_v51 }
 0x144   :  { %3933 = vmatmul.mubr.msk.f32.vlgmr.msra.gmra.mxu0 %vm667_vm1, %v3711_v2  ;;  %3935 = vmatprep.subr.mxu1 %v4415_v60  ;;  %v5040_v2 = vpop.f32.mrf.mxu0 }
 0x145   :  { %3955 = vmatpush3.xpose.msk.msra.mxu0 %vm667_vm1, %v538_v5  ;;  %3970 = vmatprep.mubr.msk.f32.mxu0 %vm4416_vm0, %v4415_v60  ;;  %v565_v5 = vmul.f32 %v4993_v46, %v4751_v13 }
 0x146   :  { %3914 = vmatmul.mubr.msk.f32.vlgmr.msra.gmra.mxu1 %vm667_vm1, %v146_v8  ;;  %3956 = vmatprep.subr.mxu0 %v4415_v60  ;;  %v5049_v6 = vpop.f32.mrf.mxu0  ;;  %v557_v8 = vmul.f32 %v4751_v13, %v317_v51 }
 0x147   :  { %3936 = vmatpush3.xpose.msk.msra.mxu1 %vm667_vm1, %v530_v9  ;;  %3951 = vmatprep.mubr.msk.f32.mxu1 %vm4416_vm0, %v4415_v60  ;;  %v564_v9 = vmul.f32 %v4993_v46, %v4762_v16 }
 0x148   :  { %3937 = vmatprep.subr.mxu1 %v4415_v60 }
 0x149   :  { %3957 = vmatpush3.xpose.msk.msra.mxu0 %vm667_vm1, %v537_v11  ;;  %v5058_v11 = vpop.f32.mrf.mxu0 }
 0x14a   :  { %3958 = vmatprep.subr.mxu0 %v4415_v60 }
 0x14b   :  { %3938 = vmatpush3.xpose.msk.msra.mxu1 %vm667_vm1, %v529_v12  ;;  %v556_v12 = vmul.f32 %v4762_v16, %v317_v51 }
 0x14c   :  { %3939 = vmatprep.subr.mxu1 %v4415_v60 }
 0x14d   :  { %3959 = vmatpush3.xpose.msk.msra.mxu0 %vm667_vm1, %v536_v14  ;;  %v563_v14 = vmul.f32 %v4993_v46, %v4773_v19 }
 0x14e   :  { %3960 = vmatprep.subr.mxu0 %v4415_v60 }
 0x14f   :  { %3940 = vmatpush3.xpose.msk.msra.mxu1 %vm667_vm1, %v528_v15  ;;  %v418_v15 = vpop.f32.mrf.mxu0 }
 0x150   :  { %3941 = vmatprep.subr.mxu1 %v4415_v60  ;;  %v591_v26 = vmul.f32 %v4729_v7, %v418_v15  ;;  %v589_v31 = vmul.f32 %v4751_v13, %v418_v15 }
 0x151   :  { %3961 = vmatpush3.xpose.msk.msra.mxu0 %vm667_vm1, %v535_v17  ;;  %v555_v17 = vmul.f32 %v4773_v19, %v317_v51 }
 0x152   :  { %3962 = vmatprep.subr.mxu0 %v4415_v60 }
 0x153   :  { %3942 = vmatpush3.xpose.msk.msra.mxu1 %vm667_vm1, %v527_v18  ;;  %v594_v18 = vmul.f32 %v4701_v61, %v418_v15 }
 0x154   :  { %3943 = vmatprep.subr.mxu1 %v4415_v60 }
 0x155   :  { %3963 = vmatpush3.xpose.msk.msra.mxu0 %vm667_vm1, %v534_v20  ;;  %v578_v20 = vmul.f32 %v4701_v61, %v5049_v6 }
 0x156   :  { %3964 = vmatprep.subr.mxu0 %v4415_v60 }
 0x157   :  { %3944 = vmatpush3.xpose.msk.msra.mxu1 %vm667_vm1, %v526_v21  ;;  %v593_v21 = vmul.f32 %v4707_v1, %v418_v15 }
 0x158   :  { %3945 = vmatprep.subr.mxu1 %v4415_v60 }
 0x159   :  { %3965 = vmatpush3.xpose.msk.msra.mxu0 %vm667_vm1, %v533_v22  ;;  %v5076_v22 = vpop.f32.mrf.mxu0 }
 0x15a   :  { %3966 = vmatprep.subr.mxu0 %v4415_v60 }
 0x15b   :  { %3946 = vmatpush3.xpose.msk.msra.mxu1 %vm667_vm1, %v525_v23  ;;  %v577_v23 = vmul.f32 %v4707_v1, %v5049_v6 }
 0x15c   :  { %3947 = vmatprep.subr.mxu1 %v4415_v60 }
 0x15d   :  { %3967 = vmatpush3.xpose.msk.msra.mxu0 %vm667_vm1, %v532_v24  ;;  %v592_v24 = vmul.f32 %v4718_v4, %v418_v15 }
 0x15e   :  { %3968 = vmatprep.subr.mxu0 %v4415_v60 }
 0x15f   :  { %3948 = vmatpush3.xpose.msk.msra.mxu1 %vm667_vm1, %v524_v25  ;;  %v576_v25 = vmul.f32 %v4718_v4, %v5049_v6 }
 0x160   :  { %3949 = vmatprep.subr.mxu1 %v4415_v60 }
 0x161   :  { %3969 = vmatpush3.xpose.msk.msra.mxu0 %vm667_vm1, %v531_v27  ;;  %v5089_v27 = vpop.f32.mrf.mxu0 }
 0x162   :  { %3992 = vmatprep.subr.mxu0 %v4415_v60 }
 0x163   :  { %3950 = vmatpush3.xpose.msk.msra.mxu1 %vm667_vm1, %v523_v29  ;;  %v590_v29 = vmul.f32 %v4740_v10, %v418_v15 }
 0x164   :  { %3971 = vmatmul.mubr.msk.f32.vlgmr.msra.gmra.mxu0 %vm667_vm1, %v3714_v28  ;;  %3973 = vmatprep.subr.mxu1 %v4415_v60  ;;  %v575_v28 = vmul.f32 %v4729_v7, %v5049_v6 }
 0x165   :  { %3993 = vmatpush3.xpose.msk.msra.mxu0 %vm667_vm1, %v554_v30  ;;  %4008 = vmatprep.mubr.msk.f32.mxu0 %vm4416_vm0, %v4415_v60  ;;  %v574_v30 = vmul.f32 %v4740_v10, %v5049_v6 }
 0x166   :  { %3952 = vmatmul.mubr.msk.f32.vlgmr.msra.gmra.mxu1 %vm667_vm1, %v156_v32  ;;  %3994 = vmatprep.subr.mxu0 %v4415_v60  ;;  %v5101_v32 = vpop.f32.mrf.mxu0 }
 0x167   :  { %3974 = vmatpush3.xpose.msk.msra.mxu1 %vm667_vm1, %v546_v33  ;;  %3989 = vmatprep.mubr.msk.f32.mxu1 %vm4416_vm0, %v4415_v60  ;;  %v573_v33 = vmul.f32 %v4751_v13, %v5049_v6 }
 0x168   :  { %3975 = vmatprep.subr.mxu1 %v4415_v60 }
 0x169   :  { %3995 = vmatpush3.xpose.msk.msra.mxu0 %vm667_vm1, %v553_v34  ;;  %v588_v34 = vmul.f32 %v4762_v16, %v418_v15 }
 0x16a   :  { %3996 = vmatprep.subr.mxu0 %v4415_v60 }
 0x16b   :  { %3976 = vmatpush3.xpose.msk.msra.mxu1 %vm667_vm1, %v545_v35  ;;  %v572_v35 = vmul.f32 %v4762_v16, %v5049_v6 }
 0x16c   :  { %3977 = vmatprep.subr.mxu1 %v4415_v60 }
 0x16d   :  { %3997 = vmatpush3.xpose.msk.msra.mxu0 %vm667_vm1, %v552_v36  ;;  %v587_v36 = vmul.f32 %v4773_v19, %v418_v15 }
 0x16e   :  { %3998 = vmatprep.subr.mxu0 %v4415_v60 }
 0x16f   :  { %3978 = vmatpush3.xpose.msk.msra.mxu1 %vm667_vm1, %v544_v37  ;;  %v5113_v37 = vpop.f32.mrf.mxu0 }
 0x170   :  { %3979 = vmatprep.subr.mxu1 %v4415_v60 }
 0x171   :  { %3999 = vmatpush3.xpose.msk.msra.mxu0 %vm667_vm1, %v551_v38  ;;  %v571_v38 = vmul.f32 %v4773_v19, %v5049_v6 }
 0x172   :  { %4000 = vmatprep.subr.mxu0 %v4415_v60 }
 0x173   :  { %3980 = vmatpush3.xpose.msk.msra.mxu1 %vm667_vm1, %v543_v39  ;;  %v5121_v39 = vpop.f32.mrf.mxu0 }
 0x174   :  { %3981 = vmatprep.subr.mxu1 %v4415_v60 }
 0x175   :  { %4001 = vmatpush3.xpose.msk.msra.mxu0 %vm667_vm1, %v550_v40  ;;  %v5128_v40 = vpop.f32.mrf.mxu0 }
 0x176   :  { %4002 = vmatprep.subr.mxu0 %v4415_v60 }
 0x177   :  { %3982 = vmatpush3.xpose.msk.msra.mxu1 %vm667_vm1, %v542_v41  ;;  %v5130_v41 = vpop.f32.mrf.mxu0 }
 0x178   :  { %3983 = vmatprep.subr.mxu1 %v4415_v60 }
 0x179   :  { %4003 = vmatpush3.xpose.msk.msra.mxu0 %vm667_vm1, %v549_v42  ;;  %v5132_v42 = vpop.f32.mrf.mxu0 }
 0x17a   :  { %4004 = vmatprep.subr.mxu0 %v4415_v60 }
 0x17b   :  { %3984 = vmatpush3.xpose.msk.msra.mxu1 %vm667_vm1, %v541_v43 }
 0x17c   :  { %3985 = vmatprep.subr.mxu1 %v4415_v60 }
 0x17d   :  { %4005 = vmatpush3.xpose.msk.msra.mxu0 %vm667_vm1, %v548_v44 }
 0x17e   :  { %4006 = vmatprep.subr.mxu0 %v4415_v60 }
 0x17f   :  { %3986 = vmatpush3.xpose.msk.msra.mxu1 %vm667_vm1, %v540_v45 }
 0x180   :  { %3987 = vmatprep.subr.mxu1 %v4415_v60 }
 0x181   :  { %4007 = vmatpush3.xpose.msk.msra.mxu0 %vm667_vm1, %v547_v47 }
 0x182   :  { %4030 = vmatprep.subr.mxu0 %v4415_v60 }
 0x183   :  { %3988 = vmatpush3.xpose.msk.msra.mxu1 %vm667_vm1, %v539_v49 }
 0x184   :  { %4009 = vmatmul.mubr.msk.f32.vlgmr.msra.gmra.mxu0 %vm667_vm1, %v3717_v48  ;;  %4011 = vmatprep.subr.mxu1 %v4415_v60 }
 0x185   :  { %4031 = vmatpush3.xpose.msk.msra.mxu0 %vm667_vm1, %v570_v50  ;;  %4046 = vmatprep.mubr.msk.f32.mxu0 %vm4416_vm0, %v4415_v60 }
 0x186   :  { %3990 = vmatmul.mubr.msk.f32.vlgmr.msra.gmra.mxu1 %vm667_vm1, %v166_v52  ;;  %4032 = vmatprep.subr.mxu0 %v4415_v60 }
 0x187   :  { %4012 = vmatpush3.xpose.msk.msra.mxu1 %vm667_vm1, %v562_v53  ;;  %4027 = vmatprep.mubr.msk.f32.mxu1 %vm4416_vm0, %v4415_v60 }
 0x188   :  { %4013 = vmatprep.subr.mxu1 %v4415_v60 }
 0x189   :  { %4033 = vmatpush3.xpose.msk.msra.mxu0 %vm667_vm1, %v569_v54 }
 0x18a   :  { %4034 = vmatprep.subr.mxu0 %v4415_v60 }
 0x18b   :  { %4014 = vmatpush3.xpose.msk.msra.mxu1 %vm667_vm1, %v561_v55 }
 0x18c   :  { %4015 = vmatprep.subr.mxu1 %v4415_v60 }
 0x18d   :  { %4035 = vmatpush3.xpose.msk.msra.mxu0 %vm667_vm1, %v568_v56 }
 0x18e   :  { %4036 = vmatprep.subr.mxu0 %v4415_v60 }
 0x18f   :  { %4016 = vmatpush3.xpose.msk.msra.mxu1 %vm667_vm1, %v560_v57 }
 0x190   :  { %4017 = vmatprep.subr.mxu1 %v4415_v60 }
 0x191   :  { %4037 = vmatpush3.xpose.msk.msra.mxu0 %vm667_vm1, %v567_v59 }
 0x192   :  { %4038 = vmatprep.subr.mxu0 %v4415_v60 }
 0x193   :  { %4018 = vmatpush3.xpose.msk.msra.mxu1 %vm667_vm1, %v559_v62 }
 0x194   :  { %4019 = vmatprep.subr.mxu1 %v4415_v60 }
 0x195   :  { %4039 = vmatpush3.xpose.msk.msra.mxu0 %vm667_vm1, %v566_v0 }
 0x196   :  { %4040 = vmatprep.subr.mxu0 %v4415_v60 }
 0x197   :  { %4020 = vmatpush3.xpose.msk.msra.mxu1 %vm667_vm1, %v558_v3 }
 0x198   :  { %4021 = vmatprep.subr.mxu1 %v4415_v60 }
 0x199   :  { %4041 = vmatpush3.xpose.msk.msra.mxu0 %vm667_vm1, %v565_v5 }
 0x19a   :  { %4042 = vmatprep.subr.mxu0 %v4415_v60 }
 0x19b   :  { %4022 = vmatpush3.xpose.msk.msra.mxu1 %vm667_vm1, %v557_v8 }
 0x19c   :  { %4023 = vmatprep.subr.mxu1 %v4415_v60 }
 0x19d   :  { %4043 = vmatpush3.xpose.msk.msra.mxu0 %vm667_vm1, %v564_v9 }
 0x19e   :  { %4044 = vmatprep.subr.mxu0 %v4415_v60 }
 0x19f   :  { %4024 = vmatpush3.xpose.msk.msra.mxu1 %vm667_vm1, %v556_v12 }
 0x1a0   :  { %4025 = vmatprep.subr.mxu1 %v4415_v60 }
 0x1a1   :  { %4045 = vmatpush3.xpose.msk.msra.mxu0 %vm667_vm1, %v563_v14 }
 0x1a2   :  { %4087 = vmatprep.subr.mxu0 %v4415_v60 }
 0x1a3   :  { %4026 = vmatpush3.xpose.msk.msra.mxu1 %vm667_vm1, %v555_v17 }
 0x1a4   :  { %4047 = vmatmul.mubr.msk.f32.vlgmr.msra.gmra.mxu0 %vm667_vm1, %v3720_v58  ;;  %4049 = vmatprep.subr.mxu1 %v4415_v60 }
 0x1a5   :  { %4088 = vmatpush3.msra.mxu0 %v594_v18  ;;  %4103 = vmatprep.mubr.msk.f32.mxu0 %vm4416_vm0, %v4415_v60 }
 0x1a6   :  { %4028 = vmatmul.mubr.msk.f32.vlgmr.msra.gmra.mxu1 %vm667_vm1, %v176_v63  ;;  %4089 = vmatprep.subr.mxu0 %v4415_v60 }
 0x1a7   :  { %4050 = vmatpush3.msra.mxu1 %v578_v20  ;;  %4090 = vmatpush3.msra.mxu0 %v593_v21 }
 0x1a8   :  { %4051 = vmatprep.subr.mxu1 %v4415_v60  ;;  %4091 = vmatprep.subr.mxu0 %v4415_v60 }
 0x1a9   :  { %4052 = vmatpush3.msra.mxu1 %v577_v23  ;;  %4092 = vmatpush3.msra.mxu0 %v592_v24  ;;  %v586_v24 = vmul.f32 %v5040_v2, %v4701_v61 }
 0x1aa   :  { %4053 = vmatprep.subr.mxu1 %v4415_v60  ;;  %4093 = vmatprep.subr.mxu0 %v4415_v60 }
 0x1ab   :  { %4054 = vmatpush3.msra.mxu1 %v576_v25  ;;  %4094 = vmatpush3.msra.mxu0 %v591_v26  ;;  %v585_v26 = vmul.f32 %v5040_v2, %v4707_v1 }
 0x1ac   :  { %4055 = vmatprep.subr.mxu1 %v4415_v60  ;;  %4095 = vmatprep.subr.mxu0 %v4415_v60 }
 0x1ad   :  { %4056 = vmatpush3.msra.mxu1 %v575_v28  ;;  %4096 = vmatpush3.msra.mxu0 %v590_v29 }
 0x1ae   :  { %4057 = vmatprep.subr.mxu1 %v4415_v60  ;;  %4097 = vmatprep.subr.mxu0 %v4415_v60 }
 0x1af   :  { %4058 = vmatpush3.msra.mxu1 %v574_v30  ;;  %4098 = vmatpush3.msra.mxu0 %v589_v31  ;;  %v584_v31 = vmul.f32 %v5040_v2, %v4718_v4 }
 0x1b0   :  { %4059 = vmatprep.subr.mxu1 %v4415_v60  ;;  %4099 = vmatprep.subr.mxu0 %v4415_v60 }
 0x1b1   :  { %4060 = vmatpush3.msra.mxu1 %v573_v33  ;;  %4100 = vmatpush3.msra.mxu0 %v588_v34  ;;  %v583_v34 = vmul.f32 %v5040_v2, %v4729_v7 }
 0x1b2   :  { %4061 = vmatprep.subr.mxu1 %v4415_v60  ;;  %4101 = vmatprep.subr.mxu0 %v4415_v60 }
 0x1b3   :  { %4062 = vmatpush3.msra.mxu1 %v572_v35  ;;  %4102 = vmatpush3.msra.mxu0 %v587_v36  ;;  %v582_v35 = vmul.f32 %v5040_v2, %v4740_v10 }
 0x1b4   :  { %4063 = vmatprep.subr.mxu1 %v4415_v60  ;;  %4065 = vmatprep.mubr.msk.f32.mxu1 %vm4416_vm0, %v4415_v60 }
 0x1b5   :  { %4064 = vmatpush3.msra.mxu1 %v571_v38  ;;  %4125 = vmatprep.subr.mxu0 %v4415_v60  ;;  %v581_v38 = vmul.f32 %v5040_v2, %v4751_v13 }
 0x1b6   :  { %4068 = vmatprep.subr.mxu1 %v4415_v60 }
 0x1c4   :  { %v5134_v43 = vpop.f32.mrf.mxu0 }
 0x1c5   :  { %v1835_v58 = vsel %vm667_vm1, %v5134_v43, -inf }
 0x1c6   :  { %v761_v44 = vpop.f32.mrf.mxu1  ;;  %v3858_v45 = vpop.f32.mrf.mxu0 }
 0x1c7   :  { %v1832_v46 = vsel %vm667_vm1, %v761_v44, -inf }
 0x1c8   :  { %1833 = vmax.xlane.f32.xlu1 %v1832_v46  ;;  %v3839_v47 = vpop.f32.mrf.mxu1 }
 0x1c9   :  { %v579_v47 = vmul.f32 %v5040_v2, %v4773_v19 }
 0x1e4   :  { %v5137_v48 = vpop.f32.mrf.mxu0 }
 0x1e5   :  { %v1841_v59 = vsel %vm667_vm1, %v5137_v48, -inf }
 0x1e6   :  { %v5139_v49 = vpop.f32.mrf.mxu1  ;;  %v3896_v50 = vpop.f32.mrf.mxu0 }
 0x1e7   :  { %v1838_v51 = vsel %vm667_vm1, %v5139_v49, -inf }
 0x1e8   :  { %1839 = vmax.xlane.f32.xlu0 %v1838_v51  ;;  %v3877_v52 = vpop.f32.mrf.mxu1 }
 0x204   :  { %v5143_v53 = vpop.f32.mrf.mxu0 }
 0x205   :  { %v1847_v62 = vsel %vm667_vm1, %v5143_v53, -inf }
 0x206   :  { %v5145_v54 = vpop.f32.mrf.mxu1  ;;  %v3934_v55 = vpop.f32.mrf.mxu0 }
 0x207   :  { %v1844_v56 = vsel %vm667_vm1, %v5145_v54, -inf  ;;  %v610_v55 = vmul.f32 %v4701_v61, %v5089_v27  ;;  %v607_v61 = vmul.f32 %v4729_v7, %v5089_v27 }
 0x208   :  { %1845 = vmax.xlane.f32.xlu0 %v1844_v56  ;;  %v3915_v57 = vpop.f32.mrf.mxu1  ;;  %v605_v56 = vmul.f32 %v4751_v13, %v5089_v27 }
 0x209   :  { %v603_v57 = vmul.f32 %v4773_v19, %v5089_v27  ;;  %v5248_v19 = vld [vmem:[%s5821_s4 + $0x38] sm:$0xff] }
 0x20c   :  { %1836 = vmax.xlane.f32.xlu0 %v1835_v58 }
 0x210   :  { %1842 = vmax.xlane.f32.xlu0 %v1841_v59 }
 0x214   :  { %1848 = vmax.xlane.f32.xlu0 %v1847_v62 }
 0x224   :  { %v5155_v63 = vpop.f32.mrf.mxu0 }
 0x225   :  { %v1853_v36 = vsel %vm667_vm1, %v5155_v63, -inf }
 0x226   :  { %v5157_v0 = vpop.f32.mrf.mxu1  ;;  %v3972_v3 = vpop.f32.mrf.mxu0 }
 0x227   :  { %v1850_v5 = vsel %vm667_vm1, %v5157_v0, -inf }
 0x228   :  { %1851 = vmax.xlane.f32.xlu1 %v1850_v5  ;;  %v3953_v6 = vpop.f32.mrf.mxu1 }
 0x244   :  { %v5161_v8 = vpop.f32.mrf.mxu0 }
 0x245   :  { %v1859_v9 = vsel %vm667_vm1, %v5161_v8, -inf }
 0x246   :  { %v5165_v12 = vpop.f32.mrf.mxu1  ;;  %1860 = vmax.xlane.f32.xlu0 %v1859_v9  ;;  %v4010_v14 = vpop.f32.mrf.mxu0  ;;  %v602_v9 = vmul.f32 %v5248_v19, %v5058_v11 }
 0x247   :  { %v1856_v15 = vsel %vm667_vm1, %v5165_v12, -inf  ;;  %v5271_v14 = vld [vmem:[%s5821_s4 + $0x28] sm:$0xff] }
 0x248   :  { %1857 = vmax.xlane.f32.xlu1 %v1856_v15  ;;  %v3991_v17 = vpop.f32.mrf.mxu1  ;;  %v624_v15 = vmul.f32 %v5271_v14, %v5113_v37 }
 0x251   :  { %v1834_v18 = vpop.xlane.xlu1 %1833 }
 0x252   :  { %v1868_v20 = vsub.f32 %v761_v44, %v1834_v18  ;;  %v580_v44 = vmul.f32 %v5040_v2, %v4762_v16  ;;  %v609_v2 = vmul.f32 %v4707_v1, %v5089_v27  ;;  %v606_v1 = vmul.f32 %v4740_v10, %v5089_v27  ;;  %v5283_v18 = vld [vmem:[%s5821_s4 + $0x20] sm:$0xff] }
 0x254   :  { %v1880_v21 = vmul.f32 1.442695, %v1868_v20  ;;  %v623_v20 = vmul.f32 %v5283_v18, %v5113_v37 }
 0x256   :  { %4347 = vpow2.f32 %v1880_v21  ;;  %v600_v21 = vmul.f32 %v5271_v14, %v5058_v11 }
 0x263   :  { %v5169_v23 = vpop.eup %4347 }
 0x264   :  { %v5173_v25 = vpop.f32.mrf.mxu0  ;;  %4066 = vmatmul.mubr.msk.f32.vlgmr.msra.gmra.mxu1 %vm667_vm1, %v5169_v23 }
 0x265   :  { %4069 = vmatpush3.msra.mxu1 %v586_v24  ;;  %4084 = vmatprep.mubr.msk.f32.mxu1 %vm4416_vm0, %v4415_v60  ;;  %v1865_v45 = vsel %vm667_vm1, %v5173_v25, -inf  ;;  %v5294_v24 = vld [vmem:[%s5821_s4 + $0x18] sm:$0xff] }
 0x266   :  { %4070 = vmatprep.subr.mxu1 %v4415_v60  ;;  %v5182_v28 = vpop.f32.mrf.mxu1  ;;  %v4048_v29 = vpop.f32.mrf.mxu0 }
 0x267   :  { %4071 = vmatpush3.msra.mxu1 %v585_v26  ;;  %v1862_v30 = vsel %vm667_vm1, %v5182_v28, -inf  ;;  %v622_v26 = vmul.f32 %v5294_v24, %v5113_v37  ;;  %v599_v29 = vmul.f32 %v5283_v18, %v5058_v11 }
 0x268   :  { %4072 = vmatprep.subr.mxu1 %v4415_v60  ;;  %1863 = vmax.xlane.f32.xlu1 %v1862_v30  ;;  %v4029_v33 = vpop.f32.mrf.mxu1  ;;  %v5305_v30 = vld [vmem:[%s5821_s4 + $0x10] sm:$0xff] }
 0x269   :  { %4073 = vmatpush3.msra.mxu1 %v584_v31  ;;  %v621_v31 = vmul.f32 %v5305_v30, %v5113_v37 }
 0x26a   :  { %4074 = vmatprep.subr.mxu1 %v4415_v60 }
 0x26b   :  { %4075 = vmatpush3.msra.mxu1 %v583_v34  ;;  %v598_v34 = vmul.f32 %v5294_v24, %v5058_v11 }
 0x26c   :  { %4076 = vmatprep.subr.mxu1 %v4415_v60  ;;  %1854 = vmax.xlane.f32.xlu1 %v1853_v36 }
 0x26d   :  { %4077 = vmatpush3.msra.mxu1 %v582_v35  ;;  %v5316_v35 = vld [vmem:[%s5821_s4 + $0x8] sm:$0xff] }
 0x26e   :  { %4078 = vmatprep.subr.mxu1 %v4415_v60  ;;  %v620_v36 = vmul.f32 %v5316_v35, %v5113_v37 }
 0x26f   :  { %4079 = vmatpush3.msra.mxu1 %v581_v38 }
 0x270   :  { %4080 = vmatprep.subr.mxu1 %v4415_v60  ;;  %1866 = vmax.xlane.f32.xlu1 %v1865_v45  ;;  %v5327_v45 = vld [vmem:[%s5821_s4] sm:$0xff] }
 0x271   :  { %4081 = vmatpush3.msra.mxu1 %v580_v44  ;;  %v1840_v46 = vpop.xlane.xlu0 %1839  ;;  %v597_v44 = vmul.f32 %v5305_v30, %v5058_v11 }
 0x272   :  { %v1870_v50 = vsub.f32 %v5139_v49, %v1840_v46  ;;  %4082 = vmatprep.subr.mxu1 %v4415_v60  ;;  %v608_v49 = vmul.f32 %v4718_v4, %v5089_v27  ;;  %v604_v4 = vmul.f32 %v4762_v16, %v5089_v27  ;;  %v626_v27 = vmul.f32 %v5248_v19, %v5113_v37 }
 0x273   :  { %4083 = vmatpush3.msra.mxu1 %v579_v47  ;;  %v619_v46 = vmul.f32 %v5327_v45, %v5113_v37 }
 0x274   :  { %v1884_v51 = vmul.f32 1.442695, %v1870_v50  ;;  %4106 = vmatprep.subr.mxu1 %v4415_v60 }
 0x276   :  { %4349 = vpow2.f32 %v1884_v51  ;;  %v596_v51 = vmul.f32 %v5316_v35, %v5058_v11 }
 0x283   :  { %v5210_v52 = vpop.eup %4349 }
 0x284   :  { %4104 = vmatmul.mubr.msk.f32.vlgmr.msra.gmra.mxu0 %vm667_vm1, %v5210_v52 }
 0x285   :  { %4126 = vmatpush3.msra.mxu0 %v610_v55  ;;  %4141 = vmatprep.mubr.msk.f32.mxu0 %vm4416_vm0, %v4415_v60 }
 0x286   :  { %4127 = vmatprep.subr.mxu0 %v4415_v60 }
 0x287   :  { %4128 = vmatpush3.msra.mxu0 %v609_v2  ;;  %v618_v2 = vmul.f32 %v5248_v19, %v5076_v22 }
 0x288   :  { %4129 = vmatprep.subr.mxu0 %v4415_v60 }
 0x289   :  { %4130 = vmatpush3.msra.mxu0 %v608_v49  ;;  %v616_v49 = vmul.f32 %v5271_v14, %v5076_v22 }
 0x28a   :  { %4131 = vmatprep.subr.mxu0 %v4415_v60 }
 0x28b   :  { %4132 = vmatpush3.msra.mxu0 %v607_v61  ;;  %v615_v61 = vmul.f32 %v5283_v18, %v5076_v22 }
 0x28c   :  { %4133 = vmatprep.subr.mxu0 %v4415_v60 }
 0x28d   :  { %4134 = vmatpush3.msra.mxu0 %v606_v1  ;;  %v614_v1 = vmul.f32 %v5294_v24, %v5076_v22 }
 0x28e   :  { %4135 = vmatprep.subr.mxu0 %v4415_v60 }
 0x28f   :  { %4136 = vmatpush3.msra.mxu0 %v605_v56  ;;  %v613_v56 = vmul.f32 %v5305_v30, %v5076_v22 }
 0x290   :  { %4137 = vmatprep.subr.mxu0 %v4415_v60 }
 0x291   :  { %4138 = vmatpush3.msra.mxu0 %v604_v4  ;;  %v1846_v7 = vpop.xlane.xlu0 %1845 }
 0x292   :  { %v1872_v10 = vsub.f32 %v5145_v54, %v1846_v7  ;;  %4139 = vmatprep.subr.mxu0 %v4415_v60  ;;  %v612_v7 = vmul.f32 %v5316_v35, %v5076_v22 }
 0x293   :  { %4140 = vmatpush3.msra.mxu0 %v603_v57  ;;  %v642_v57 = vmul.f32 %v5248_v19, %v5128_v40 }
 0x294   :  { %v1888_v58 = vmul.f32 1.442695, %v1872_v10  ;;  %4163 = vmatprep.subr.mxu0 %v4415_v60  ;;  %v611_v10 = vmul.f32 %v5327_v45, %v5076_v22 }
 0x295   :  { %v1837_v13 = vpop.xlane.xlu0 %1836 }
 0x296   :  { %4351 = vpow2.f32 %v1888_v58  ;;  %v1869_v59 = vsub.f32 %v5134_v43, %v1837_v13  ;;  %v5257_v43 = vld [vmem:[%s5821_s4 + $0x30] sm:$0xff] }
 0x297   :  { %v601_v17 = vmul.f32 %v5257_v43, %v5058_v11  ;;  %v641_v58 = vmul.f32 %v5257_v43, %v5128_v40 }
 0x298   :  { %v1882_v16 = vmul.f32 1.442695, %v1869_v59  ;;  %v634_v59 = vmul.f32 %v5248_v19, %v5101_v32 }
 0x299   :  { %v1843_v62 = vpop.xlane.xlu0 %1842 }
 0x29a   :  { %4353 = vpow2.f32 %v1882_v16  ;;  %v1871_v3 = vsub.f32 %v5137_v48, %v1843_v62  ;;  %v625_v48 = vmul.f32 %v5257_v43, %v5113_v37  ;;  %v595_v37 = vmul.f32 %v5327_v45, %v5058_v11 }
 0x29b   :  { %v617_v11 = vmul.f32 %v5257_v43, %v5076_v22  ;;  %v640_v22 = vmul.f32 %v5271_v14, %v5128_v40  ;;  %v633_v16 = vmul.f32 %v5257_v43, %v5101_v32  ;;  %v639_v62 = vmul.f32 %v5283_v18, %v5128_v40 }
 0x29c   :  { %v1886_v54 = vmul.f32 1.442695, %v1871_v3  ;;  %v632_v3 = vmul.f32 %v5271_v14, %v5101_v32 }
 0x29d   :  { %v1849_v33 = vpop.xlane.xlu0 %1848 }
 0x29e   :  { %4355 = vpow2.f32 %v1886_v54  ;;  %v1873_v47 = vsub.f32 %v5143_v53, %v1849_v33  ;;  %v637_v54 = vmul.f32 %v5305_v30, %v5128_v40  ;;  %v627_v33 = vmul.f32 %v5327_v45, %v5101_v32 }
 0x2a0   :  { %v1890_v53 = vmul.f32 1.442695, %v1873_v47 }
 0x2a3   :  { %v5243_v5 = vpop.eup %4351 }
 0x2a4   :  { %4142 = vmatmul.mubr.msk.f32.vlgmr.msra.gmra.mxu0 %vm667_vm1, %v5243_v5 }
 0x2a5   :  { %4164 = vmatpush3.msra.mxu0 %v626_v27  ;;  %4179 = vmatprep.mubr.msk.f32.mxu0 %vm4416_vm0, %v4415_v60  ;;  %v638_v27 = vmul.f32 %v5294_v24, %v5128_v40 }
 0x2a6   :  { %4165 = vmatprep.subr.mxu0 %v4415_v60 }
 0x2a7   :  { %v5264_v6 = vpop.eup %4353  ;;  %4166 = vmatpush3.msra.mxu0 %v625_v48  ;;  %v631_v48 = vmul.f32 %v5283_v18, %v5101_v32 }
 0x2a8   :  { %4167 = vmatprep.subr.mxu0 %v4415_v60  ;;  %4085 = vmatmul.mubr.msk.f32.vlgmr.msra.gmra.mxu1 %vm667_vm1, %v5264_v6 }
 0x2a9   :  { %4107 = vmatpush3.msra.mxu1 %v602_v9  ;;  %4168 = vmatpush3.msra.mxu0 %v624_v15  ;;  %v630_v9 = vmul.f32 %v5294_v24, %v5101_v32  ;;  %v636_v15 = vmul.f32 %v5316_v35, %v5128_v40 }
 0x2aa   :  { %4108 = vmatprep.subr.mxu1 %v4415_v60  ;;  %4169 = vmatprep.subr.mxu0 %v4415_v60 }
 0x2ab   :  { %4109 = vmatpush3.msra.mxu1 %v601_v17  ;;  %4170 = vmatpush3.msra.mxu0 %v623_v20  ;;  %v629_v20 = vmul.f32 %v5305_v30, %v5101_v32 }
 0x2ac   :  { %4110 = vmatprep.subr.mxu1 %v4415_v60  ;;  %4171 = vmatprep.subr.mxu0 %v4415_v60 }
 0x2ad   :  { %4111 = vmatpush3.msra.mxu1 %v600_v21  ;;  %4172 = vmatpush3.msra.mxu0 %v622_v26  ;;  %v635_v26 = vmul.f32 %v5327_v45, %v5128_v40 }
 0x2ae   :  { %4112 = vmatprep.subr.mxu1 %v4415_v60  ;;  %4173 = vmatprep.subr.mxu0 %v4415_v60 }
 0x2af   :  { %4113 = vmatpush3.msra.mxu1 %v599_v29  ;;  %4174 = vmatpush3.msra.mxu0 %v621_v31  ;;  %v628_v29 = vmul.f32 %v5316_v35, %v5101_v32  ;;  %v657_v32 = vmul.f32 %v5257_v43, %v5132_v42 }
 0x2b0   :  { %4114 = vmatprep.subr.mxu1 %v4415_v60  ;;  %4175 = vmatprep.subr.mxu0 %v4415_v60 }
 0x2b1   :  { %4115 = vmatpush3.msra.mxu1 %v598_v34  ;;  %4176 = vmatpush3.msra.mxu0 %v620_v36  ;;  %v1852_v38 = vpop.xlane.xlu1 %1851  ;;  %v656_v34 = vmul.f32 %v5271_v14, %v5132_v42  ;;  %v655_v36 = vmul.f32 %v5283_v18, %v5132_v42 }
 0x2b2   :  { %v1874_v50 = vsub.f32 %v5157_v0, %v1852_v38  ;;  %4116 = vmatprep.subr.mxu1 %v4415_v60  ;;  %4177 = vmatprep.subr.mxu0 %v4415_v60  ;;  %v5344_v0 = vpop.eup %4355  ;;  %v654_v38 = vmul.f32 %v5294_v24, %v5132_v42 }
 0x2b3   :  { %4117 = vmatpush3.msra.mxu1 %v597_v44  ;;  %4178 = vmatpush3.msra.mxu0 %v619_v46  ;;  %v653_v44 = vmul.f32 %v5305_v30, %v5132_v42  ;;  %v652_v46 = vmul.f32 %v5316_v35, %v5132_v42 }
 0x2b4   :  { %v1892_v55 = vmul.f32 1.442695, %v1874_v50  ;;  %4118 = vmatprep.subr.mxu1 %v4415_v60  ;;  %4122 = vmatprep.mubr.msk.f32.mxu1 %vm4416_vm0, %v4415_v60  ;;  %v651_v50 = vmul.f32 %v5327_v45, %v5132_v42 }
 0x2b5   :  { %4119 = vmatpush3.msra.mxu1 %v596_v51  ;;  %4201 = vmatprep.subr.mxu0 %v4415_v60 }
 0x2b6   :  { %4357 = vpow2.f32 %v1892_v55  ;;  %4120 = vmatprep.subr.mxu1 %v4415_v60 }
 0x2b7   :  { %4121 = vmatpush3.msra.mxu1 %v595_v37  ;;  %4359 = vpow2.f32 %v1890_v53 }
 0x2b8   :  { %4123 = vmatmul.mubr.msk.f32.vlgmr.msra.gmra.mxu1 %vm667_vm1, %v5344_v0  ;;  %4144 = vmatprep.subr.mxu1 %v4415_v60 }
 0x2b9   :  { %4145 = vmatpush3.msra.mxu1 %v618_v2  ;;  %4160 = vmatprep.mubr.msk.f32.mxu1 %vm4416_vm0, %v4415_v60 }
 0x2ba   :  { %4146 = vmatprep.subr.mxu1 %v4415_v60 }
 0x2bb   :  { %4147 = vmatpush3.msra.mxu1 %v617_v11 }
 0x2bc   :  { %4148 = vmatprep.subr.mxu1 %v4415_v60 }
 0x2bd   :  { %4149 = vmatpush3.msra.mxu1 %v616_v49 }
 0x2be   :  { %4150 = vmatprep.subr.mxu1 %v4415_v60 }
 0x2bf   :  { %4151 = vmatpush3.msra.mxu1 %v615_v61 }
 0x2c0   :  { %4152 = vmatprep.subr.mxu1 %v4415_v60 }
 0x2c1   :  { %4153 = vmatpush3.msra.mxu1 %v614_v1  ;;  %v647_v1 = vmul.f32 %v5283_v18, %v5121_v39 }
 0x2c2   :  { %4154 = vmatprep.subr.mxu1 %v4415_v60 }
 0x2c3   :  { %v5368_v4 = vpop.eup %4357  ;;  %4155 = vmatpush3.msra.mxu1 %v613_v56 }
 0x2c4   :  { %4156 = vmatprep.subr.mxu1 %v4415_v60  ;;  %4180 = vmatmul.mubr.msk.f32.vlgmr.msra.gmra.mxu0 %vm667_vm1, %v5368_v4  ;;  %v5383_v13 = vpop.eup %4359 }
 0x2c5   :  { %4157 = vmatpush3.msra.mxu1 %v612_v7  ;;  %4202 = vmatpush3.msra.mxu0 %v642_v57  ;;  %v646_v7 = vmul.f32 %v5294_v24, %v5121_v39  ;;  %v645_v57 = vmul.f32 %v5305_v30, %v5121_v39 }
 0x2c6   :  { %4158 = vmatprep.subr.mxu1 %v4415_v60  ;;  %4203 = vmatprep.subr.mxu0 %v4415_v60 }
 0x2c7   :  { %4159 = vmatpush3.msra.mxu1 %v611_v10  ;;  %4204 = vmatpush3.msra.mxu0 %v641_v58  ;;  %v644_v58 = vmul.f32 %v5316_v35, %v5121_v39 }
 0x2c8   :  { %4161 = vmatmul.mubr.msk.f32.vlgmr.msra.gmra.mxu1 %vm667_vm1, %v5383_v13  ;;  %4182 = vmatprep.subr.mxu1 %v4415_v60 }
 0x2c9   :  { %4205 = vmatprep.subr.mxu0 %v4415_v60  ;;  %4183 = vmatpush3.msra.mxu1 %v634_v59 }
 0x2ca   :  { %4206 = vmatpush3.msra.mxu0 %v640_v22  ;;  %4184 = vmatprep.subr.mxu1 %v4415_v60 }
 0x2cb   :  { %4207 = vmatprep.subr.mxu0 %v4415_v60  ;;  %4185 = vmatpush3.msra.mxu1 %v633_v16  ;;  %v666_v16 = vmul.f32 %v5248_v19, %v5130_v41 }
 0x2cc   :  { %4208 = vmatpush3.msra.mxu0 %v639_v62  ;;  %4186 = vmatprep.subr.mxu1 %v4415_v60 }
 0x2cd   :  { %4209 = vmatprep.subr.mxu0 %v4415_v60  ;;  %4187 = vmatpush3.msra.mxu1 %v632_v3  ;;  %v2955_v3 = vld [vmem:[%s5822_s5 + $0x10] sm:$0xff] }
 0x2ce   :  { %4210 = vmatpush3.msra.mxu0 %v638_v27  ;;  %4188 = vmatprep.subr.mxu1 %v4415_v60 }
 0x2cf   :  { %4211 = vmatprep.subr.mxu0 %v4415_v60  ;;  %4189 = vmatpush3.msra.mxu1 %v631_v48  ;;  %v1861_v11 = vpop.xlane.xlu0 %1860  ;;  %v2954_v48 = vld [vmem:[%s5822_s5 + $0x8] sm:$0xff] }
 0x2d0   :  { %4212 = vmatpush3.msra.mxu0 %v637_v54  ;;  %4190 = vmatprep.subr.mxu1 %v4415_v60  ;;  %v1877_v49 = vsub.f32 %v5161_v8, %v1861_v11  ;;  %v649_v8 = vmul.f32 %v5257_v43, %v5121_v39 }
 0x2d1   :  { %4213 = vmatprep.subr.mxu0 %v4415_v60  ;;  %4191 = vmatpush3.msra.mxu1 %v630_v9  ;;  %v1858_v17 = vpop.xlane.xlu1 %1857  ;;  %v2953_v9 = vld [vmem:[%s5822_s5] sm:$0xff] }
 0x2d2   :  { %4214 = vmatpush3.msra.mxu0 %v636_v15  ;;  %v1876_v21 = vsub.f32 %v5165_v12, %v1858_v17  ;;  %4192 = vmatprep.subr.mxu1 %v4415_v60  ;;  %v658_v12 = vmul.f32 %v5248_v19, %v5132_v42  ;;  %v1898_v42 = vmul.f32 1.442695, %v1877_v49 }
 0x2d3   :  { %4215 = vmatprep.subr.mxu0 %v4415_v60  ;;  %4193 = vmatpush3.msra.mxu1 %v629_v20 }
 0x2d4   :  { %v1896_v31 = vmul.f32 1.442695, %v1876_v21  ;;  %4216 = vmatpush3.msra.mxu0 %v635_v26  ;;  %4194 = vmatprep.subr.mxu1 %v4415_v60 }
 0x2d5   :  { %4195 = vmatpush3.msra.mxu1 %v628_v29  ;;  %4217 = vmatprep.mubr.msk.f32.mxu0 %vm4416_vm0, %v4415_v60 }
 0x2d6   :  { %4361 = vpow2.f32 %v1896_v31  ;;  %4196 = vmatprep.subr.mxu1 %v4415_v60  ;;  %4239 = vmatprep.subr.mxu0 %v4415_v60 }
 0x2d7   :  { %4197 = vmatpush3.msra.mxu1 %v627_v33  ;;  %4198 = vmatprep.mubr.msk.f32.mxu1 %vm4416_vm0, %v4415_v60 }
 0x2d8   :  { %4220 = vmatprep.subr.mxu1 %v4415_v60 }
 0x2e3   :  { %v5436_v40 = vpop.eup %4361 }
 0x2e4   :  { %4218 = vmatmul.mubr.msk.f32.vlgmr.msra.gmra.mxu0 %vm667_vm1, %v5436_v40 }
 0x2e5   :  { %4240 = vmatpush3.msra.mxu0 %v658_v12  ;;  %4255 = vmatprep.mubr.msk.f32.mxu0 %vm4416_vm0, %v4415_v60 }
 0x2e6   :  { %4241 = vmatprep.subr.mxu0 %v4415_v60 }
 0x2e7   :  { %4242 = vmatpush3.msra.mxu0 %v657_v32 }
 0x2e8   :  { %4243 = vmatprep.subr.mxu0 %v4415_v60 }
 0x2e9   :  { %4244 = vmatpush3.msra.mxu0 %v656_v34 }
 0x2ea   :  { %4245 = vmatprep.subr.mxu0 %v4415_v60 }
 0x2eb   :  { %4246 = vmatpush3.msra.mxu0 %v655_v36 }
 0x2ec   :  { %4247 = vmatprep.subr.mxu0 %v4415_v60 }
 0x2ed   :  { %4248 = vmatpush3.msra.mxu0 %v654_v38 }
 0x2ee   :  { %4249 = vmatprep.subr.mxu0 %v4415_v60 }
 0x2ef   :  { %4250 = vmatpush3.msra.mxu0 %v653_v44 }
 0x2f0   :  { %4251 = vmatprep.subr.mxu0 %v4415_v60 }
 0x2f1   :  { %4252 = vmatpush3.msra.mxu0 %v652_v46  ;;  %v1864_v47 = vpop.xlane.xlu1 %1863 }
 0x2f2   :  { %v1878_v51 = vsub.f32 %v5182_v28, %v1864_v47  ;;  %4253 = vmatprep.subr.mxu0 %v4415_v60 }
 0x2f3   :  { %4254 = vmatpush3.msra.mxu0 %v651_v50 }
 0x2f4   :  { %v1900_v55 = vmul.f32 1.442695, %v1878_v51  ;;  %4277 = vmatprep.subr.mxu0 %v5248_v19 }
 0x2f5   :  { %v1855_v37 = vpop.xlane.xlu1 %1854 }
 0x2f6   :  { %4363 = vpow2.f32 %v1900_v55  ;;  %v1875_v53 = vsub.f32 %v5155_v63, %v1855_v37  ;;  %v650_v63 = vmul.f32 %v5248_v19, %v5121_v39 }
 0x2f8   :  { %v1894_v2 = vmul.f32 1.442695, %v1875_v53 }
 0x2f9   :  { %v1867_v56 = vpop.xlane.xlu1 %1866 }
 0x2fa   :  { %4365 = vpow2.f32 %v1894_v2  ;;  %v1879_v10 = vsub.f32 %v5173_v25, %v1867_v56  ;;  %v643_v25 = vmul.f32 %v5327_v45, %v5121_v39 }
 0x2fb   :  { %4367 = vpow2.f32 %v1898_v42 }
 0x2fc   :  { %v1902_v59 = vmul.f32 1.442695, %v1879_v10 }
 0x2fe   :  { %4369 = vpow2.f32 %v1902_v59 }
 0x303   :  { %v5469_v61 = vpop.eup %4363 }
 0x304   :  { %4256 = vmatmul.mubr.msk.f32.vlgmr.msra.gmra.mxu0 %vm667_vm1, %v5469_v61 }
 0x305   :  { %4278 = vmatpush3.msra.mxu0 %v5248_v19  ;;  %4293 = vmatprep.mubr.msk.f32.mxu0 %vm667_vm1, %v5169_v23  ;;  %v648_v23 = vmul.f32 %v5271_v14, %v5121_v39  ;;  %v665_v39 = vmul.f32 %v5257_v43, %v5130_v41  ;;  %v663_v19 = vmul.f32 %v5283_v18, %v5130_v41 }
 0x306   :  { %4279 = vmatprep.subr.mxu0 %v5257_v43 }
 0x307   :  { %v5477_v28 = vpop.eup %4365  ;;  %4280 = vmatpush3.msra.mxu0 %v5257_v43  ;;  %v661_v43 = vmul.f32 %v5305_v30, %v5130_v41 }
 0x308   :  { %4281 = vmatprep.subr.mxu0 %v5271_v14  ;;  %4199 = vmatmul.mubr.msk.f32.vlgmr.msra.gmra.mxu1 %vm667_vm1, %v5477_v28  ;;  %v4368_v22 = vpop.eup %4367 }
 0x309   :  { %4221 = vmatpush3.msra.mxu1 %v650_v63  ;;  %4282 = vmatpush3.msra.mxu0 %v5271_v14 }
 0x30a   :  { %4222 = vmatprep.subr.mxu1 %v4415_v60  ;;  %4283 = vmatprep.subr.mxu0 %v5283_v18 }
 0x30b   :  { %4223 = vmatpush3.msra.mxu1 %v649_v8  ;;  %4284 = vmatpush3.msra.mxu0 %v5283_v18  ;;  %v659_v18 = vmul.f32 %v5327_v45, %v5130_v41  ;;  %v2930_v8 = vld [vmem:[%s5823_s6 + $0x8] sm:$0xff] }
 0x30c   :  { %4224 = vmatprep.subr.mxu1 %v4415_v60  ;;  %4285 = vmatprep.subr.mxu0 %v5294_v24 }
 0x30d   :  { %4225 = vmatpush3.msra.mxu1 %v648_v23  ;;  %4286 = vmatpush3.msra.mxu0 %v5294_v24 }
 0x30e   :  { %4226 = vmatprep.subr.mxu1 %v4415_v60  ;;  %4287 = vmatprep.subr.mxu0 %v5305_v30 }
 0x30f   :  { %4227 = vmatpush3.msra.mxu1 %v647_v1  ;;  %4288 = vmatpush3.msra.mxu0 %v5305_v30  ;;  %v4370_v30 = vpop.eup %4369 }
 0x310   :  { %4228 = vmatprep.subr.mxu1 %v4415_v60  ;;  %4289 = vmatprep.subr.mxu0 %v5316_v35 }
 0x311   :  { %4229 = vmatpush3.msra.mxu1 %v646_v7  ;;  %4290 = vmatpush3.msra.mxu0 %v5316_v35 }
 0x312   :  { %4230 = vmatprep.subr.mxu1 %v4415_v60  ;;  %4291 = vmatprep.subr.mxu0 %v5327_v45 }
 0x313   :  { %4231 = vmatpush3.msra.mxu1 %v645_v57  ;;  %4292 = vmatpush3.msra.mxu0 %v5327_v45  ;;  %v2957_v45 = vld [vmem:[%s5822_s5 + $0x20] sm:$0xff] }
 0x314   :  { %4232 = vmatprep.subr.mxu1 %v4415_v60  ;;  %4294 = vmatmul.mubr.msk.f32.vlgmr.msra.gmra.mxu0 %vm667_vm1, %v5264_v6  ;;  %v660_v6 = vmul.f32 %v5316_v35, %v5130_v41 }
 0x315   :  { %4233 = vmatpush3.msra.mxu1 %v644_v58  ;;  %4296 = vmatprep.mubr.msk.f32.mxu0 %vm667_vm1, %v5210_v52  ;;  %v664_v52 = vmul.f32 %v5271_v14, %v5130_v41 }
 0x316   :  { %4234 = vmatprep.subr.mxu1 %v4415_v60  ;;  %4236 = vmatprep.mubr.msk.f32.mxu1 %vm4416_vm0, %v4415_v60 }
 0x317   :  { %4235 = vmatpush3.msra.mxu1 %v643_v25  ;;  %v2931_v25 = vld [vmem:[%s5823_s6 + $0x10] sm:$0xff] }
 0x318   :  { %4237 = vmatmul.mubr.msk.f32.vlgmr.msra.gmra.mxu1 %vm667_vm1, %v4368_v22  ;;  %4258 = vmatprep.subr.mxu1 %v4415_v60 }
 0x319   :  { %4297 = vmatmul.mubr.msk.f32.gmra.mxu0 %vm667_vm1, %v5344_v0  ;;  %4259 = vmatpush3.msra.mxu1 %v666_v16 }
 0x31a   :  { %4299 = vmatprep.mubr.msk.f32.mxu0 %vm667_vm1, %v5243_v5  ;;  %4260 = vmatprep.subr.mxu1 %v4415_v60  ;;  %v662_v5 = vmul.f32 %v5294_v24, %v5130_v41  ;;  %v2958_v41 = vld [vmem:[%s5822_s5 + $0x28] sm:$0xff] }
 0x31b   :  { %4261 = vmatpush3.msra.mxu1 %v665_v39  ;;  %4274 = vmatprep.mubr.msk.f32.mxu1 %vm4416_vm0, %v4415_v60  ;;  %v2932_v39 = vld [vmem:[%s5823_s6 + $0x18] sm:$0xff] }
 0x31c   :  { %4262 = vmatprep.subr.mxu1 %v4415_v60 }
 0x31d   :  { %4300 = vmatmul.mubr.msk.f32.gmra.mxu0 %vm667_vm1, %v5383_v13  ;;  %4263 = vmatpush3.msra.mxu1 %v664_v52  ;;  %v2956_v13 = vld [vmem:[%s5822_s5 + $0x18] sm:$0xff] }
 0x31e   :  { %4302 = vmatprep.mubr.msk.f32.mxu0 %vm667_vm1, %v5368_v4  ;;  %4264 = vmatprep.subr.mxu1 %v4415_v60  ;;  %v2960_v4 = vld [vmem:[%s5822_s5 + $0x38] sm:$0xff] }
 0x31f   :  { %4265 = vmatpush3.msra.mxu1 %v663_v19 }
 0x320   :  { %4266 = vmatprep.subr.mxu1 %v4415_v60 }
 0x321   :  { %4303 = vmatmul.mubr.msk.f32.gmra.mxu0 %vm667_vm1, %v5477_v28  ;;  %4267 = vmatpush3.msra.mxu1 %v662_v5 }
 0x322   :  { %4305 = vmatprep.mubr.msk.f32.mxu0 %vm667_vm1, %v5436_v40  ;;  %4268 = vmatprep.subr.mxu1 %v4415_v60 }
 0x323   :  { %4269 = vmatpush3.msra.mxu1 %v661_v43 }
 0x324   :  { %4270 = vmatprep.subr.mxu1 %v4415_v60  ;;  %v5560_v14 = vpop.f32.mrf.mxu1 }
 0x325   :  { %4306 = vmatmul.mubr.msk.f32.gmra.mxu0 %vm667_vm1, %v4368_v22  ;;  %4271 = vmatpush3.msra.mxu1 %v660_v6 }
 0x326   :  { %4308 = vmatprep.mubr.msk.f32.mxu0 %vm667_vm1, %v5469_v61  ;;  %4272 = vmatprep.subr.mxu1 %v4415_v60  ;;  %v4067_v24 = vpop.f32.mrf.mxu1  ;;  %v2959_v60 = vld [vmem:[%s5822_s5 + $0x30] sm:$0xff]  ;;  %v2929_v61 = vld [vmem:[%s5823_s6] sm:$0xff] }
 0x327   :  { %4273 = vmatpush3.msra.mxu1 %v659_v18 }
 0x328   :  { %4275 = vmatmul.mubr.msk.f32.vlgmr.msra.gmra.mxu1 %vm667_vm1, %v4370_v30  ;;  %4311 = vmatprep.subr.mxu1 %v2960_v4 }
 0x329   :  { %4309 = vmatmul.mubr.msk.f32.gmra.mxu0 %vm667_vm1, %v4370_v30  ;;  %4312 = vmatpush3.msra.mxu1 %v2960_v4  ;;  %v2934_v30 = vld [vmem:[%s5823_s6 + $0x28] sm:$0xff] }
 0x32a   :  { %4313 = vmatprep.subr.mxu1 %v2959_v60 }
 0x32b   :  { %4314 = vmatpush3.msra.mxu1 %v2959_v60 }
 0x32c   :  { %4315 = vmatprep.subr.mxu1 %v2958_v41 }
 0x32d   :  { %4316 = vmatpush3.msra.mxu1 %v2958_v41  ;;  %v2935_v41 = vld [vmem:[%s5823_s6 + $0x30] sm:$0xff] }
 0x32e   :  { %4317 = vmatprep.subr.mxu1 %v2957_v45 }
 0x32f   :  { %4318 = vmatpush3.msra.mxu1 %v2957_v45 }
 0x330   :  { %4319 = vmatprep.subr.mxu1 %v2956_v13 }
 0x331   :  { %4320 = vmatpush3.msra.mxu1 %v2956_v13 }
 0x332   :  { %4321 = vmatprep.subr.mxu1 %v2955_v3 }
 0x333   :  { %4322 = vmatpush3.msra.mxu1 %v2955_v3 }
 0x334   :  { %4323 = vmatprep.subr.mxu1 %v2954_v48 }
 0x335   :  { %4324 = vmatpush3.msra.mxu1 %v2954_v48 }
 0x336   :  { %4325 = vmatprep.subr.mxu1 %v2953_v9 }
 0x337   :  { %4326 = vmatpush3.msra.mxu1 %v2953_v9  ;;  %v2937_v9 = vld [vmem:[%s5823_s6 + $0x40] sm:$0xff] }
 0x344   :  { %v5570_v35 = vpop.f32.mrf.mxu0 }
 0x346   :  { %v4105_v0 = vpop.f32.mrf.mxu0 }
 0x364   :  { %v5587_v62 = vpop.f32.mrf.mxu0 }
 0x366   :  { %v4143_v27 = vpop.f32.mrf.mxu0 }
 0x368   :  { %v2046_v54 = vpop.f32.mrf.mxu1 }
 0x36a   :  { %v4086_v15 = vpop.f32.mrf.mxu1 }
 0x378   :  { %v2192_v17 = vpop.f32.mrf.mxu1 }
 0x37a   :  { %v4124_v20 = vpop.f32.mrf.mxu1 }
 0x37b   :  { %v2938_v20 = vld [vmem:[%s5823_s6 + $0x48] sm:$0xff] }
 0x384   :  { %v5598_v21 = vpop.f32.mrf.mxu0 }
 0x386   :  { %v4181_v26 = vpop.f32.mrf.mxu0 }
 0x388   :  { %v2338_v29 = vpop.f32.mrf.mxu1 }
 0x38a   :  { %v4162_v31 = vpop.f32.mrf.mxu1 }
 0x3a4   :  { %v5600_v33 = vpop.f32.mrf.mxu0 }
 0x3a6   :  { %v4219_v40 = vpop.f32.mrf.mxu0 }
 0x3a7   :  { %v2939_v40 = vld [vmem:[%s5823_s6 + $0x50] sm:$0xff] }
 0x3c4   :  { %v5602_v12 = vpop.f32.mrf.mxu0 }
 0x3c6   :  { %v4257_v32 = vpop.f32.mrf.mxu0 }
 0x3c8   :  { %v2484_v34 = vpop.f32.mrf.mxu1 }
 0x3ca   :  { %v4200_v36 = vpop.f32.mrf.mxu1 }
 0x3d4   :  { %v4295_v38 = vpop.f32.mrf.mxu0 }
 0x3d5   :  { %4371 = vrcp.f32 %v4295_v38 }
 0x3d6   :  { %v2846_v44 = vpop.f32.mrf.mxu0 }
 0x3d7   :  { %4373 = vrcp.f32 %v2846_v44  ;;  %v3135_v44 = vld [vmem:[%s5824_s8 + $0x8] sm:$0xff] }
 0x3d8   :  { %v5604_v46 = vpop.f32.mrf.mxu1 }
 0x3d9   :  { %v4298_v47 = vpop.f32.mrf.mxu0 }
 0x3da   :  { %4375 = vrcp.f32 %v4298_v47  ;;  %v4238_v50 = vpop.f32.mrf.mxu1  ;;  %v4403_v47 = vld [vmem:[%s5818_s0 + $0x8] sm:$0xff] }
 0x3db   :  { %v2856_v51 = vpop.f32.mrf.mxu0  ;;  %v3147_v50 = vmul.f32 %v4403_v47, %v3135_v44 }
 0x3dc   :  { %4377 = vrcp.f32 %v2856_v51 }
 0x3dd   :  { %v4301_v55 = vpop.f32.mrf.mxu0 }
 0x3de   :  { %4379 = vrcp.f32 %v4301_v55  ;;  %v2961_v55 = vld [vmem:[%s5825_s7] sm:$0xff] }
 0x3df   :  { %v2866_v37 = vpop.f32.mrf.mxu0 }
 0x3e0   :  { %4381 = vrcp.f32 %v2866_v37 }
 0x3e1   :  { %v4304_v53 = vpop.f32.mrf.mxu0 }
 0x3e2   :  { %v4372_v2 = vpop.eup %4371  ;;  %4383 = vrcp.f32 %v4304_v53  ;;  %v4404_v53 = vld [vmem:[%s5818_s0] sm:$0xff] }
 0x3e3   :  { %v2876_v11 = vpop.f32.mrf.mxu0  ;;  %v2918_v42 = vmul.f32 %v4372_v2, %v2046_v54 }
 0x3e4   :  { %v4374_v49 = vpop.eup %4373  ;;  %4385 = vrcp.f32 %v2876_v11  ;;  %v3137_v11 = vld [vmem:[%s5824_s8 + $0x18] sm:$0xff] }
 0x3e5   :  { %v4307_v28 = vpop.f32.mrf.mxu0  ;;  %v2917_v63 = vmul.f32 %v4374_v49, %v5560_v14  ;;  %v2942_v57 = vmul.f32 %v2930_v8, %v2918_v42  ;;  %v2933_v14 = vld [vmem:[%s5823_s6 + $0x20] sm:$0xff]  ;;  %v4405_v8 = vld [vmem:[%s5818_s0 + $0x18] sm:$0xff] }
 0x3e6   :  { %4387 = vrcp.f32 %v4307_v28  ;;  %v2964_v28 = vld [vmem:[%s5825_s7 + $0x18] sm:$0xff] }
 0x3e7   :  { %v4376_v23 = vpop.eup %4375  ;;  %v2886_v1 = vpop.f32.mrf.mxu0  ;;  %v2941_v56 = vmul.f32 %v2929_v61, %v2917_v63  ;;  %v3136_v63 = vld [vmem:[%s5824_s8 + $0x10] sm:$0xff] }
 0x3e8   :  { %4389 = vrcp.f32 %v2886_v1  ;;  %v2776_v7 = vpop.f32.mrf.mxu1  ;;  %v2920_v59 = vmul.f32 %v4376_v23, %v2192_v17  ;;  %v3149_v23 = vmul.f32 %v4405_v8, %v3137_v11 }
 0x3e9   :  { %v4378_v10 = vpop.eup %4377  ;;  %v4310_v58 = vpop.f32.mrf.mxu0  ;;  %4327 = vmatprep.mubr.msk.f32.mxu1 %vm667_vm1, %v2941_v56 }
 0x3ea   :  { %4391 = vrcp.f32 %v4310_v58  ;;  %v4276_v22 = vpop.f32.mrf.mxu1  ;;  %4328 = vmatmul.mubr.msk.f32.vlgmr.msra.gmra.mxu1 %vm667_vm1, %v2942_v57  ;;  %v2919_v16 = vmul.f32 %v4378_v10, %v5570_v35  ;;  %v2944_v6 = vmul.f32 %v2932_v39, %v2920_v59  ;;  %v3139_v57 = vld [vmem:[%s5824_s8 + $0x28] sm:$0xff]  ;;  %v4406_v58 = vld [vmem:[%s5818_s0 + $0x10] sm:$0xff] }
 0x3eb   :  { %v4380_v52 = vpop.eup %4379  ;;  %v2896_v19 = vpop.f32.mrf.mxu0  ;;  %v2966_v22 = vld [vmem:[%s5825_s7 + $0x28] sm:$0xff] }
 0x3ec   :  { %4393 = vrcp.f32 %v2896_v19  ;;  %v2943_v5 = vmul.f32 %v2931_v25, %v2919_v16  ;;  %v2922_v18 = vmul.f32 %v4380_v52, %v2338_v29  ;;  %v3148_v25 = vmul.f32 %v4406_v58, %v3136_v63  ;;  %v3138_v16 = vld [vmem:[%s5824_s8 + $0x20] sm:$0xff]  ;;  %v4407_v19 = vld [vmem:[%s5818_s0 + $0x28] sm:$0xff] }
 0x3ed   :  { %v4382_v43 = vpop.eup %4381 }
 0x3ee   :  { %4330 = vmatprep.mubr.msk.f32.mxu1 %vm667_vm1, %v2943_v5  ;;  %v2921_v24 = vmul.f32 %v4382_v43, %v5587_v62  ;;  %v2946_v60 = vmul.f32 %v2934_v30, %v2922_v18  ;;  %v2936_v62 = vld [vmem:[%s5823_s6 + $0x38] sm:$0xff]  ;;  %v3151_v5 = vmul.f32 %v4407_v19, %v3139_v57  ;;  %v4408_v30 = vld [vmem:[%s5818_s0 + $0x20] sm:$0xff] }
 0x3ef   :  { %v4384_v35 = vpop.eup %4383  ;;  %4331 = vmatmul.mubr.msk.f32.gmra.mxu1 %vm667_vm1, %v2944_v6  ;;  %v2965_v6 = vld [vmem:[%s5825_s7 + $0x20] sm:$0xff] }
 0x3f0   :  { %v2945_v0 = vmul.f32 %v2933_v14, %v2921_v24  ;;  %v2924_v45 = vmul.f32 %v4384_v35, %v2484_v34  ;;  %v3141_v14 = vld [vmem:[%s5824_s8 + $0x38] sm:$0xff]  ;;  %v3150_v35 = vmul.f32 %v4408_v30, %v3138_v16 }
 0x3f1   :  { %v4386_v4 = vpop.eup %4385 }
 0x3f2   :  { %4333 = vmatprep.mubr.msk.f32.mxu1 %vm667_vm1, %v2945_v0  ;;  %v2923_v13 = vmul.f32 %v4386_v4, %v5598_v21  ;;  %v2948_v54 = vmul.f32 %v2936_v62, %v2924_v45  ;;  %v2968_v4 = vld [vmem:[%s5825_s7 + $0x38] sm:$0xff] }
 0x3f3   :  { %v4388_v3 = vpop.eup %4387  ;;  %4334 = vmatmul.mubr.msk.f32.gmra.mxu1 %vm667_vm1, %v2946_v60  ;;  %v3140_v60 = vld [vmem:[%s5824_s8 + $0x30] sm:$0xff] }
 0x3f4   :  { %v2947_v27 = vmul.f32 %v2935_v41, %v2923_v13  ;;  %v2926_v15 = vmul.f32 %v4388_v3, %v5604_v46  ;;  %v3134_v46 = vld [vmem:[%s5824_s8] sm:$0xff]  ;;  %v4409_v13 = vld [vmem:[%s5818_s0 + $0x38] sm:$0xff] }
 0x3f5   :  { %v4390_v48 = vpop.eup %4389  ;;  %v3146_v2 = vmul.f32 %v4404_v53, %v3134_v46  ;;  %v3153_v62 = vmul.f32 %v4409_v13, %v3141_v14  ;;  %v4413_v53 = vld [vmem:[%s5818_s0 + $0x58] sm:$0xff] }
 0x3f6   :  { %4336 = vmatprep.mubr.msk.f32.mxu1 %vm667_vm1, %v2947_v27  ;;  %v2925_v17 = vmul.f32 %v4390_v48, %v5600_v33  ;;  %v2950_v31 = vmul.f32 %v2938_v20, %v2926_v15  ;;  %v2940_v33 = vld [vmem:[%s5823_s6 + $0x58] sm:$0xff]  ;;  %v2967_v27 = vld [vmem:[%s5825_s7 + $0x30] sm:$0xff]  ;;  %v3143_v48 = vld [vmem:[%s5824_s8 + $0x48] sm:$0xff] }
 0x3f7   :  { %v4392_v21 = vpop.eup %4391  ;;  %4337 = vmatmul.mubr.msk.f32.gmra.mxu1 %vm667_vm1, %v2948_v54  ;;  %v4410_v15 = vld [vmem:[%s5818_s0 + $0x30] sm:$0xff] }
 0x3f8   :  { %v2949_v26 = vmul.f32 %v2937_v9, %v2925_v17  ;;  %v2928_v32 = vmul.f32 %v4392_v21, %v2776_v7  ;;  %v2963_v7 = vld [vmem:[%s5825_s7 + $0x10] sm:$0xff]  ;;  %v3152_v17 = vmul.f32 %v4410_v15, %v3140_v60  ;;  %v2970_v21 = vld [vmem:[%s5825_s7 + $0x48] sm:$0xff] }
 0x3f9   :  { %v4394_v29 = vpop.eup %4393 }
 0x3fa   :  { %4339 = vmatprep.mubr.msk.f32.mxu1 %vm667_vm1, %v2949_v26  ;;  %v2927_v34 = vmul.f32 %v4394_v29, %v5602_v12  ;;  %v2952_v38 = vmul.f32 %v2940_v33, %v2928_v32  ;;  %v2962_v12 = vld [vmem:[%s5825_s7 + $0x8] sm:$0xff]  ;;  %v3142_v26 = vld [vmem:[%s5824_s8 + $0x40] sm:$0xff] }
 0x3fb   :  { %4340 = vmatmul.mubr.msk.f32.gmra.mxu1 %vm667_vm1, %v2950_v31  ;;  %v2969_v33 = vld [vmem:[%s5825_s7 + $0x40] sm:$0xff] }
 0x3fc   :  { %v2951_v36 = vmul.f32 %v2939_v40, %v2927_v34  ;;  %v4411_v40 = vld [vmem:[%s5818_s0 + $0x48] sm:$0xff] }
 0x3fd   :  { %v3155_v32 = vmul.f32 %v4411_v40, %v3143_v48 }
 0x3fe   :  { %4342 = vmatprep.mubr.msk.f32.mxu1 %vm667_vm1, %v2951_v36  ;;  %v3145_v36 = vld [vmem:[%s5824_s8 + $0x58] sm:$0xff] }
 0x3ff   :  { %4343 = vmatmul.mubr.msk.f32.gmra.mxu1 %vm667_vm1, %v2952_v38 }
 0x4aa   :  { %v4329_v51 = vpop.f32.mrf.mxu1 }
 0x4ab   :  { %v3081_v37 = vadd.f32 %v4329_v51, %v2962_v12  ;;  %v4412_v12 = vld [vmem:[%s5818_s0 + $0x40] sm:$0xff]  ;;  %v3144_v51 = vld [vmem:[%s5824_s8 + $0x50] sm:$0xff] }
 0x4ac   :  { %v3075_v49 = vpop.f32.mrf.mxu1  ;;  %v3154_v46 = vmul.f32 %v4412_v12, %v3142_v26 }
 0x4ad   :  { %v3159_v61 = vadd.f32 %v3147_v50, %v3081_v37  ;;  %v3076_v42 = vadd.f32 %v3075_v49, %v2961_v55  ;;  %v2972_v50 = vld [vmem:[%s5825_s7 + $0x58] sm:$0xff]  ;;  %v2971_v49 = vld [vmem:[%s5825_s7 + $0x50] sm:$0xff] }
 0x4af   :  { %3172 = vst.msk [vmem:[%s5826_s9 + $0x8] sm:$0xff] %vm3170_vm2, %v3159_v61  ;;  %v3158_v1 = vadd.f32 %v3146_v2, %v3076_v42  ;;  %v4332_v56 = vpop.f32.mrf.mxu1  ;;  %v3157_v2 = vmul.f32 %v4413_v53, %v3145_v36 }
 0x4b0   :  { %v3091_v10 = vadd.f32 %v4332_v56, %v2964_v28  ;;  %v4414_v28 = vld [vmem:[%s5818_s0 + $0x50] sm:$0xff] }
 0x4b1   :  { %3171 = vst.msk [vmem:[%s5826_s9] sm:$0xff] %vm3170_vm2, %v3158_v1  ;;  %v3085_v59 = vpop.f32.mrf.mxu1  ;;  %v3156_v63 = vmul.f32 %v4414_v28, %v3144_v51 }
 0x4b2   :  { %v3161_v39 = vadd.f32 %v3149_v23, %v3091_v10  ;;  %v3086_v52 = vadd.f32 %v3085_v59, %v2963_v7 }
 0x4b3   :  { %v4335_v43 = vpop.f32.mrf.mxu1 }
 0x4b4   :  { %3174 = vst.msk [vmem:[%s5826_s9 + $0x18] sm:$0xff] %vm3170_vm2, %v3161_v39  ;;  %v3160_v18 = vadd.f32 %v3148_v25, %v3086_v52  ;;  %v3101_v24 = vadd.f32 %v4335_v43, %v2966_v22 }
 0x4b5   :  { %v3095_v0 = vpop.f32.mrf.mxu1 }
 0x4b6   :  { %3173 = vst.msk [vmem:[%s5826_s9 + $0x10] sm:$0xff] %vm3170_vm2, %v3160_v18  ;;  %v3163_v41 = vadd.f32 %v3151_v5, %v3101_v24  ;;  %v3096_v45 = vadd.f32 %v3095_v0, %v2965_v6 }
 0x4b7   :  { %v4338_v3 = vpop.f32.mrf.mxu1 }
 0x4b8   :  { %3176 = vst.msk [vmem:[%s5826_s9 + $0x28] sm:$0xff] %vm3170_vm2, %v3163_v41  ;;  %v3162_v54 = vadd.f32 %v3150_v35, %v3096_v45  ;;  %v3111_v9 = vadd.f32 %v4338_v3, %v2968_v4 }
 0x4b9   :  { %v3105_v20 = vpop.f32.mrf.mxu1 }
 0x4ba   :  { %3175 = vst.msk [vmem:[%s5826_s9 + $0x20] sm:$0xff] %vm3170_vm2, %v3162_v54  ;;  %v3165_v29 = vadd.f32 %v3153_v62, %v3111_v9  ;;  %v3106_v31 = vadd.f32 %v3105_v20, %v2967_v27 }
 0x4bb   :  { %v4341_v34 = vpop.f32.mrf.mxu1 }
 0x4bc   :  { %3178 = vst.msk [vmem:[%s5826_s9 + $0x38] sm:$0xff] %vm3170_vm2, %v3165_v29  ;;  %v3164_v38 = vadd.f32 %v3152_v17, %v3106_v31  ;;  %v3121_v44 = vadd.f32 %v4341_v34, %v2970_v21 }
 0x4bd   :  { %v3115_v47 = vpop.f32.mrf.mxu1 }
 0x4be   :  { %3177 = vst.msk [vmem:[%s5826_s9 + $0x30] sm:$0xff] %vm3170_vm2, %v3164_v38  ;;  %v3167_v55 = vadd.f32 %v3155_v32, %v3121_v44  ;;  %v3116_v37 = vadd.f32 %v3115_v47, %v2969_v33 }
 0x4bf   :  { %v4344_v11 = vpop.f32.mrf.mxu1 }
 0x4c0   :  { %3180 = vst.msk [vmem:[%s5826_s9 + $0x48] sm:$0xff] %vm3170_vm2, %v3167_v55  ;;  %v3166_v61 = vadd.f32 %v3154_v46, %v3116_v37  ;;  %v3131_v42 = vadd.f32 %v4344_v11, %v2972_v50 }
 0x4c1   :  { %v3125_v8 = vpop.f32.mrf.mxu1 }
 0x4c2   :  { %3179 = vst.msk [vmem:[%s5826_s9 + $0x40] sm:$0xff] %vm3170_vm2, %v3166_v61  ;;  %v3169_v23 = vadd.f32 %v3157_v2, %v3131_v42  ;;  %v3126_v1 = vadd.f32 %v3125_v8, %v2971_v49 }
 0x4c4   :  { %3182 = vst.msk [vmem:[%s5826_s9 + $0x58] sm:$0xff] %vm3170_vm2, %v3169_v23  ;;  %v3168_v56 = vadd.f32 %v3156_v63, %v3126_v1 }
 0x4c6   :  { %3181 = vst.msk [vmem:[%s5826_s9 + $0x50] sm:$0xff] %vm3170_vm2, %v3168_v56 }

</bundles_post_ra>
